<compile_context>
chip_gen: v7x
topology: tpu7x:2x2x1
jax: 0.10.0
libtpu: 0.0.40
codegen_flags: <defaults>
</compile_context>

<pallas_src>
import functools

import jax
import jax.numpy as jnp
from jax.experimental import pallas as pl
from jax.experimental.pallas import tpu as pltpu

DTYPE = jnp.float32
LN_EPS = 1e-5
VMEM_LIMIT = 32 * 1024 * 1024  # explicit scoped-VMEM budget; safe on v5e/v6e/v7x


def _tile(dim, target, align):
    """Largest `align`-multiple divisor of `dim` that is <= target, else full dim."""
    if dim <= target:
        return dim
    t = (target // align) * align
    while t >= align:
        if dim % t == 0:
            return t
        t -= align
    return dim


# --------------------------------------------------------------------------------------
# Kernel 1: tiled matmul (+ optional fused bias / GELU / residual add)
# --------------------------------------------------------------------------------------
def _mm_kernel(x_ref, w_ref, b_ref, *rest, activation, has_residual):
    if has_residual:
        res_ref, o_ref, acc_ref = rest
    else:
        o_ref, acc_ref = rest
    kk = pl.program_id(2)

    @pl.when(kk == 0)
    def _():
        acc_ref[...] = jnp.zeros_like(acc_ref)

    acc_ref[...] += jnp.dot(
        x_ref[...].astype(jnp.bfloat16),
        w_ref[...].astype(jnp.bfloat16),
        preferred_element_type=jnp.float32)

    @pl.when(kk == pl.num_programs(2) - 1)
    def _():
        out = acc_ref[...] + b_ref[...].astype(jnp.float32)
        if activation == "gelu":
            # TODO(synk): reference GELU flavor unspecified; tanh approximation assumed.
            out = jax.nn.gelu(out, approximate=True)
        if has_residual:
            out = out + res_ref[...].astype(jnp.float32)
        o_ref[...] = out.astype(o_ref.dtype)


def linear(x2d, w, b, *, residual=None, activation=None,
           tm_target=512, tn_target=512, tk_target=512):
    m, k = x2d.shape
    k2, n = w.shape
    assert k == k2
    tm = _tile(m, tm_target, 8)
    tn = _tile(n, tn_target, 128)
    tk = _tile(k, tk_target, 128)
    has_res = residual is not None
    kern = functools.partial(_mm_kernel, activation=activation, has_residual=has_res)

    in_specs = [
        pl.BlockSpec((tm, tk), lambda i, j, kk: (i, kk)),
        pl.BlockSpec((tk, tn), lambda i, j, kk: (kk, j)),
        pl.BlockSpec((1, tn), lambda i, j, kk: (0, j)),
    ]
    args = [x2d, w, b.reshape(1, n)]
    if has_res:
        in_specs.append(pl.BlockSpec((tm, tn), lambda i, j, kk: (i, j)))
        args.append(residual)

    return pl.pallas_call(
        kern,
        out_shape=jax.ShapeDtypeStruct((m, n), x2d.dtype),
        grid=(m // tm, n // tn, k // tk),
        in_specs=in_specs,
        out_specs=pl.BlockSpec((tm, tn), lambda i, j, kk: (i, j)),
        scratch_shapes=[pltpu.VMEM((tm, tn), jnp.float32)],
        compiler_params=pltpu.CompilerParams(
            dimension_semantics=("parallel", "parallel", "arbitrary"),
            vmem_limit_bytes=VMEM_LIMIT),
    )(*args)


# --------------------------------------------------------------------------------------
# Kernel 2: LayerNorm fused into the following matmul (K kept whole: LN needs full row)
# --------------------------------------------------------------------------------------
def _ln_mm_kernel(x_ref, g_ref, be_ref, w_ref, b_ref, o_ref, *, activation):
    x = x_ref[...].astype(jnp.float32)
    mu = jnp.mean(x, axis=-1, keepdims=True)
    var = jnp.mean(jnp.square(x - mu), axis=-1, keepdims=True)
    xn = (x - mu) * jax.lax.rsqrt(var + LN_EPS)
    xn = xn * g_ref[...].astype(jnp.float32) + be_ref[...].astype(jnp.float32)
    acc = jnp.dot(xn.astype(jnp.bfloat16), w_ref[...].astype(jnp.bfloat16),
                  preferred_element_type=jnp.float32)
    acc = acc + b_ref[...].astype(jnp.float32)
    if activation == "gelu":
        acc = jax.nn.gelu(acc, approximate=True)
    o_ref[...] = acc.astype(o_ref.dtype)


def ln_linear(x2d, gamma, beta, w, b, *, activation=None,
              tm_target=512, tn_target=512):
    m, k = x2d.shape
    k2, n = w.shape
    assert k == k2
    tm = _tile(m, tm_target, 8)
    tn = _tile(n, tn_target, 128)
    kern = functools.partial(_ln_mm_kernel, activation=activation)
    return pl.pallas_call(
        kern,
        out_shape=jax.ShapeDtypeStruct((m, n), x2d.dtype),
        grid=(m // tm, n // tn),
        in_specs=[pl.BlockSpec((tm, k), lambda i, j: (i, 0)),
                  pl.BlockSpec((1, k), lambda i, j: (0, 0)),
                  pl.BlockSpec((1, k), lambda i, j: (0, 0)),
                  pl.BlockSpec((k, tn), lambda i, j: (0, j)),
                  pl.BlockSpec((1, tn), lambda i, j: (0, j))],
        out_specs=pl.BlockSpec((tm, tn), lambda i, j: (i, j)),
        compiler_params=pltpu.CompilerParams(
            dimension_semantics=("parallel", "parallel"),
            vmem_limit_bytes=VMEM_LIMIT),
    )(x2d, gamma.reshape(1, k), beta.reshape(1, k), w, b.reshape(1, n))


# --------------------------------------------------------------------------------------
# Kernel 3: final LayerNorm (row-tiled, parallel grid)
# --------------------------------------------------------------------------------------
def _ln_kernel(x_ref, g_ref, b_ref, o_ref):
    x = x_ref[...].astype(jnp.float32)
    mu = jnp.mean(x, axis=-1, keepdims=True)
    var = jnp.mean(jnp.square(x - mu), axis=-1, keepdims=True)
    y = (x - mu) * jax.lax.rsqrt(var + LN_EPS)
    o_ref[...] = (y * g_ref[...] + b_ref[...]).astype(o_ref.dtype)


def layernorm(x2d, gamma, beta, tm_target=1024):
    m, d = x2d.shape
    tm = _tile(m, tm_target, 8)
    return pl.pallas_call(
        _ln_kernel,
        out_shape=jax.ShapeDtypeStruct((m, d), x2d.dtype),
        grid=(m // tm,),
        in_specs=[pl.BlockSpec((tm, d), lambda i: (i, 0)),
                  pl.BlockSpec((1, d), lambda i: (0, 0)),
                  pl.BlockSpec((1, d), lambda i: (0, 0))],
        out_specs=pl.BlockSpec((tm, d), lambda i: (i, 0)),
        compiler_params=pltpu.CompilerParams(
            dimension_semantics=("parallel",),
            vmem_limit_bytes=VMEM_LIMIT),
    )(x2d, gamma.reshape(1, d), beta.reshape(1, d))


# --------------------------------------------------------------------------------------
# Kernel 4: attention — packed QKV in, lane-dense (S, D) out, per-batch grid
# --------------------------------------------------------------------------------------
def _attn_kernel(qkv_ref, o_ref, *, num_heads, scale):
    d3 = qkv_ref.shape[2]
    d = d3 // 3
    dh = d // num_heads
    qkv = qkv_ref[0]                                        # (S, 3D) f32, in VMEM
    q = qkv[:, :d].astype(jnp.float32) * scale              # fold scale into q once
    k = qkv[:, d:2 * d]
    v = qkv[:, 2 * d:]
    outs = []
    for h in range(num_heads):                              # static unroll over heads
        sl = slice(h * dh, (h + 1) * dh)
        qh = q[:, sl].astype(jnp.bfloat16)
        kh = k[:, sl].astype(jnp.bfloat16)
        vh = v[:, sl].astype(jnp.bfloat16)
        s = jax.lax.dot_general(qh, kh, (((1,), (1,)), ((), ())),
                                preferred_element_type=jnp.float32)     # (S, S) f32
        s = s - jnp.max(s, axis=-1, keepdims=True)
        p = jnp.exp(s)
        p = p * pl.reciprocal(jnp.sum(p, axis=-1, keepdims=True), approx=True)
        outs.append(jnp.dot(p.astype(jnp.bfloat16), vh,
                            preferred_element_type=jnp.float32))        # (S, dh)
    o_ref[0] = jnp.concatenate(outs, axis=-1).astype(o_ref.dtype)       # lane-dense D


def attention(qkv_3d, num_heads):
    # qkv_3d: (B, S, 3D) -> (B, S, D)
    b, s, d3 = qkv_3d.shape
    d = d3 // 3
    dh = d // num_heads
    scale = 1.0 / float(dh) ** 0.5
    kern = functools.partial(_attn_kernel, num_heads=num_heads, scale=scale)
    # TODO(synk): for long sequences switch to a flash-style kv-tiled online softmax;
    # at JEPA-predictor S (tens to low hundreds) the full (S,S) per head fits VMEM.
    return pl.pallas_call(
        kern,
        out_shape=jax.ShapeDtypeStruct((b, s, d), qkv_3d.dtype),
        grid=(b,),
        in_specs=[pl.BlockSpec((1, s, d3), lambda i: (i, 0, 0))],
        out_specs=pl.BlockSpec((1, s, d), lambda i: (i, 0, 0)),
        compiler_params=pltpu.CompilerParams(
            dimension_semantics=("parallel",),
            vmem_limit_bytes=VMEM_LIMIT),
    )(qkv_3d)


# --------------------------------------------------------------------------------------
# Predictor components (glue in plain JAX, heavy math in the kernels above)
# --------------------------------------------------------------------------------------
def context_embed(params, c, mask_idx):
    # c: (B, Nc, Din); mask_idx: (B, Nc) int32 patch indices
    b, nc, din = c.shape
    d = params["pos_table"].shape[-1]
    h = linear(c.reshape(b * nc, din), params["ctx_w"], params["ctx_b"])
    return h.reshape(b, nc, d) + params["pos_table"][mask_idx]   # gather + add (glue)


def mask_embed(params, t_idx):
    # t_idx: (B, Nt) int32 -> (B, Nt, D)
    return params["mask_token"][None, None, :] + params["pos_table"][t_idx]


def latent_embed(params, z):
    # z: (B, Dz) -> (B, 1, D)
    return linear(z, params["lat_w"], params["lat_b"])[:, None, :]


def merge_embedding_outputs(c_emb, m_emb, z_emb):
    # segment order: 0 = context, 1 = latent, 2 = mask/target tokens
    return jnp.concatenate([c_emb, z_emb, m_emb], axis=1)


def extract_embedding(p, idx, n_tgt):
    assert idx == 2
    return p[:, -n_tgt:, :]


def transformer_block(blk, x, num_heads):
    b, s, d = x.shape
    x2 = x.reshape(b * s, d)

    # LN1 fused into the QKV projection; attention consumes the packed QKV slab
    # directly and emits a lane-dense (B, S, D) output (no head transposes via HBM).
    qkv = ln_linear(x2, blk["ln1_g"], blk["ln1_b"], blk["qkv_w"], blk["qkv_b"])
    attn = attention(qkv.reshape(b, s, 3 * d), num_heads)
    # Output projection with residual add fused into the matmul epilogue.
    x2 = linear(attn.reshape(b * s, d), blk["proj_w"], blk["proj_b"], residual=x2)

    # LN2 fused into FC1 (+GELU); FC2 with residual add fused.
    h = ln_linear(x2, blk["ln2_g"], blk["ln2_b"], blk["fc1_w"], blk["fc1_b"],
                  activation="gelu")
    x2 = linear(h, blk["fc2_w"], blk["fc2_b"], residual=x2)
    return x2.reshape(b, s, d)


def transformer(params, x, num_heads):
    for blk in params["blocks"]:
        x = transformer_block(blk, x, num_heads)
    b, s, d = x.shape
    x = layernorm(x.reshape(b * s, d), params["lnf_g"], params["lnf_b"]).reshape(b, s, d)
    return x


def predictor_forward(params, context_list, context_mask_list, target_mask, z,
                      num_targets=4, num_heads=4):
    num_nested = len(context_list)
    target_mask_list = jnp.split(target_mask, num_targets, axis=0)
    target_mask_list = [jnp.split(m, num_nested, axis=0) for m in target_mask_list]

    ctx = [context_embed(params, c, m) for c, m in zip(context_list, context_mask_list)]
    z_emb = latent_embed(params, z)

    # Reference semantics: `predictions` is overwritten each target iteration and
    # appended only after the loop -> only the LAST target survives.  Compute only it.
    outputs = []
    t_last = target_mask_list[-1]
    embeddings_list = [
        merge_embedding_outputs(c, mask_embed(params, t), z_emb)
        for c, t in zip(ctx, t_last)
    ]
    predictions = [transformer(params, e, num_heads) for e in embeddings_list]
    predictions = [extract_embedding(p, 2, t.shape[1])
                   for p, t in zip(predictions, t_last)]
    outputs.append(predictions)
    return outputs


# --------------------------------------------------------------------------------------
# Deterministic parameter init (shapes implied by __init__ / assumed sub-modules)
# --------------------------------------------------------------------------------------
def _init_linear(key, fan_in, fan_out):
    kw, kb = jax.random.split(key)
    w = jax.random.normal(kw, (fan_in, fan_out), DTYPE) / jnp.sqrt(float(fan_in))
    b = 0.01 * jax.random.normal(kb, (fan_out,), DTYPE)
    return w, b


def init_params(key, *, d_in, d_model, d_z, num_layers, num_patches,
                head_dim, mlp_ratio=4):
    keys = jax.random.split(key, 8 + num_layers)
    ctx_w, ctx_b = _init_linear(keys[0], d_in, d_model)
    lat_w, lat_b = _init_linear(keys[1], d_z, d_model)
    head_w, head_b = _init_linear(keys[2], d_model, head_dim)   # defined but unused
    params = dict(
        ctx_w=ctx_w, ctx_b=ctx_b,
        lat_w=lat_w, lat_b=lat_b,
        head_w=head_w, head_b=head_b,
        pos_table=0.02 * jax.random.normal(keys[3], (num_patches, d_model), DTYPE),
        mask_token=0.02 * jax.random.normal(keys[4], (d_model,), DTYPE),
        lnf_g=jnp.ones((d_model,), DTYPE), lnf_b=jnp.zeros((d_model,), DTYPE),
        blocks=[],
    )
    d_mlp = mlp_ratio * d_model
    for i in range(num_layers):
        ks = jax.random.split(keys[8 + i], 4)
        qkv_w, qkv_b = _init_linear(ks[0], d_model, 3 * d_model)
        proj_w, proj_b = _init_linear(ks[1], d_model, d_model)
        fc1_w, fc1_b = _init_linear(ks[2], d_model, d_mlp)
        fc2_w, fc2_b = _init_linear(ks[3], d_mlp, d_model)
        params["blocks"].append(dict(
            ln1_g=jnp.ones((d_model,), DTYPE), ln1_b=jnp.zeros((d_model,), DTYPE),
            ln2_g=jnp.ones((d_model,), DTYPE), ln2_b=jnp.zeros((d_model,), DTYPE),
            qkv_w=qkv_w, qkv_b=qkv_b, proj_w=proj_w, proj_b=proj_b,
            fc1_w=fc1_w, fc1_b=fc1_b, fc2_w=fc2_w, fc2_b=fc2_b,
        ))
    return params


# --------------------------------------------------------------------------------------
if __name__ == "__main__":
    B, N_CTX, N_TGT = 2, 6, 4
    D_IN, D_MODEL, D_Z = 24, 32, 8
    NUM_HEADS, NUM_LAYERS = 4, 2
    HEAD_DIM = 16
    NUM_PATCHES = 16
    NUM_TARGETS = 2
    NUM_NESTED = 1

    root = jax.random.PRNGKey(0)
    kp, kc, kcm, kt, kz = jax.random.split(root, 5)
    params = init_params(kp, d_in=D_IN, d_model=D_MODEL, d_z=D_Z,
                         num_layers=NUM_LAYERS, num_patches=NUM_PATCHES,
                         head_dim=HEAD_DIM)

    context_list = [jax.random.normal(kc, (B, N_CTX, D_IN), DTYPE)]
    context_mask_list = [jax.random.randint(kcm, (B, N_CTX), 0, NUM_PATCHES)]
    target_mask = jax.random.randint(
        kt, (NUM_TARGETS * NUM_NESTED * B, N_TGT), 0, NUM_PATCHES)
    z = jax.random.normal(kz, (B, D_Z), DTYPE)

    fwd = jax.jit(functools.partial(
        predictor_forward, num_targets=NUM_TARGETS, num_heads=NUM_HEADS))
    outputs = fwd(params, context_list, context_mask_list, target_mask, z)

    for preds in outputs:
        for p in preds:
            jax.block_until_ready(p)
            assert p.shape == (B, N_TGT, D_MODEL)
            assert bool(jnp.all(jnp.isfinite(p)))
    print("KERNEL_OK")
</pallas_src>

<mosaic_0001>
module attributes {stable_mosaic.version = 11 : i64} {
  func.func @_mm_kernel(%arg0: i32, %arg1: i32, %arg2: i32, %arg3: memref<2x8xf32, #tpu.memory_space<vmem>>, %arg4: memref<8x32xf32, #tpu.memory_space<vmem>>, %arg5: memref<1x32xf32, #tpu.memory_space<vmem>>, %arg6: memref<2x32xf32, #tpu.memory_space<vmem>>, %arg7: memref<2x32xf32, #tpu.memory_space<vmem>>) attributes {dimension_semantics = [#tpu.dimension_semantics<parallel>, #tpu.dimension_semantics<parallel>, #tpu.dimension_semantics<arbitrary>], iteration_bounds = array<i64: 1, 1, 1>, scalar_prefetch = 0 : i64, scratch_operands = 1 : i64, tpu.core_type = #tpu.core_type<tc>, window_params = [{transform_indices = @transform_0, window_bounds = array<i64: 2, 8>}, {transform_indices = @transform_1, window_bounds = array<i64: 8, 32>}, {transform_indices = @transform_2, window_bounds = array<i64: 1, 32>}, {transform_indices = @transform_3, window_bounds = array<i64: 2, 32>}]} {
    %c0_i32 = arith.constant 0 : i32
    %0 = arith.cmpi eq, %arg2, %c0_i32 : i32
    %1 = arith.extui %0 : i1 to i32
    %c0_i32_0 = arith.constant 0 : i32
    %2 = arith.cmpi ne, %1, %c0_i32_0 : i32
    scf.if %2 {
      %cst_10 = arith.constant 0.000000e+00 : f32
      %14 = vector.broadcast %cst_10 : f32 to vector<2x32xf32>
      %c0_11 = arith.constant 0 : index
      %c0_12 = arith.constant 0 : index
      %15 = vector.load %arg7[%c0_11, %c0_12] : memref<2x32xf32, #tpu.memory_space<vmem>>, vector<2x32xf32>
      tpu.vector_store %arg7[%c0_11, %c0_12], %14 {strides = array<i32>} : memref<2x32xf32, #tpu.memory_space<vmem>>, vector<2x32xf32>,
    } else {
    }
    %c0 = arith.constant 0 : index
    %c0_1 = arith.constant 0 : index
    %3 = vector.load %arg7[%c0, %c0_1] : memref<2x32xf32, #tpu.memory_space<vmem>>, vector<2x32xf32>
    %c0_2 = arith.constant 0 : index
    %c0_3 = arith.constant 0 : index
    %4 = vector.load %arg3[%c0_2, %c0_3] : memref<2x8xf32, #tpu.memory_space<vmem>>, vector<2x8xf32>
    %5 = arith.truncf %4 : vector<2x8xf32> to vector<2x8xbf16>
    %c0_4 = arith.constant 0 : index
    %c0_5 = arith.constant 0 : index
    %6 = vector.load %arg4[%c0_4, %c0_5] : memref<8x32xf32, #tpu.memory_space<vmem>>, vector<8x32xf32>
    %7 = arith.truncf %6 : vector<8x32xf32> to vector<8x32xbf16>
    %cst = arith.constant dense<0.000000e+00> : vector<2x32xf32>
    %8 = tpu.matmul %5, %7, %cst {dimension_numbers = #tpu.dot_dimension_numbers<[1], [0], [0], [1], [0, 0, 1, 1], [], []>} : vector<2x8xbf16>, vector<8x32xbf16>, vector<2x32xf32> -> vector<2x32xf32>
    %9 = arith.addf %3, %8 : vector<2x32xf32>
    %c0_6 = arith.constant 0 : index
    %c0_7 = arith.constant 0 : index
    %10 = vector.load %arg7[%c0_6, %c0_7] : memref<2x32xf32, #tpu.memory_space<vmem>>, vector<2x32xf32>
    tpu.vector_store %arg7[%c0_6, %c0_7], %9 {strides = array<i32>} : memref<2x32xf32, #tpu.memory_space<vmem>>, vector<2x32xf32>,
    %c0_i32_8 = arith.constant 0 : i32
    %11 = arith.cmpi eq, %arg2, %c0_i32_8 : i32
    %12 = arith.extui %11 : i1 to i32
    %c0_i32_9 = arith.constant 0 : i32
    %13 = arith.cmpi ne, %12, %c0_i32_9 : i32
    scf.if %13 {
      %c0_10 = arith.constant 0 : index
      %c0_11 = arith.constant 0 : index
      %14 = vector.load %arg7[%c0_10, %c0_11] : memref<2x32xf32, #tpu.memory_space<vmem>>, vector<2x32xf32>
      %c0_12 = arith.constant 0 : index
      %c0_13 = arith.constant 0 : index
      %15 = vector.load %arg5[%c0_12, %c0_13] : memref<1x32xf32, #tpu.memory_space<vmem>>, vector<1x32xf32>
      %16 = vector.broadcast %15 : vector<1x32xf32> to vector<2x32xf32>
      %17 = arith.addf %14, %16 : vector<2x32xf32>
      %c0_14 = arith.constant 0 : index
      %c0_15 = arith.constant 0 : index
      %18 = vector.load %arg6[%c0_14, %c0_15] : memref<2x32xf32, #tpu.memory_space<vmem>>, vector<2x32xf32>
      tpu.vector_store %arg6[%c0_14, %c0_15], %17 {strides = array<i32>} : memref<2x32xf32, #tpu.memory_space<vmem>>, vector<2x32xf32>,
    } else {
    }
    return
  }
  func.func @transform_0(%arg0: i32, %arg1: i32, %arg2: i32) -> (i32, i32) {
    %c0_i32 = arith.constant 0 : i32
    return %arg0, %arg2 : i32, i32
  }
  func.func @transform_1(%arg0: i32, %arg1: i32, %arg2: i32) -> (i32, i32) {
    %c0_i32 = arith.constant 0 : i32
    return %arg2, %arg1 : i32, i32
  }
  func.func @transform_2(%arg0: i32, %arg1: i32, %arg2: i32) -> (i32, i32) {
    %c0_i32 = arith.constant 0 : i32
    %c0_i32_0 = arith.constant 0 : i32
    return %c0_i32, %arg1 : i32, i32
  }
  func.func @transform_3(%arg0: i32, %arg1: i32, %arg2: i32) -> (i32, i32) {
    %c0_i32 = arith.constant 0 : i32
    return %arg0, %arg1 : i32, i32
  }
}

module attributes {stable_mosaic.version = 11 : i64} {
  func.func @_mm_kernel(%arg0: i32, %arg1: i32, %arg2: i32, %arg3: memref<12x24xf32, #tpu.memory_space<vmem>>, %arg4: memref<24x32xf32, #tpu.memory_space<vmem>>, %arg5: memref<1x32xf32, #tpu.memory_space<vmem>>, %arg6: memref<12x32xf32, #tpu.memory_space<vmem>>, %arg7: memref<12x32xf32, #tpu.memory_space<vmem>>) attributes {dimension_semantics = [#tpu.dimension_semantics<parallel>, #tpu.dimension_semantics<parallel>, #tpu.dimension_semantics<arbitrary>], iteration_bounds = array<i64: 1, 1, 1>, scalar_prefetch = 0 : i64, scratch_operands = 1 : i64, tpu.core_type = #tpu.core_type<tc>, window_params = [{transform_indices = @transform_0, window_bounds = array<i64: 12, 24>}, {transform_indices = @transform_1, window_bounds = array<i64: 24, 32>}, {transform_indices = @transform_2, window_bounds = array<i64: 1, 32>}, {transform_indices = @transform_3, window_bounds = array<i64: 12, 32>}]} {
    %c0_i32 = arith.constant 0 : i32
    %0 = arith.cmpi eq, %arg2, %c0_i32 : i32
    %1 = arith.extui %0 : i1 to i32
    %c0_i32_0 = arith.constant 0 : i32
    %2 = arith.cmpi ne, %1, %c0_i32_0 : i32
    scf.if %2 {
      %cst_10 = arith.constant 0.000000e+00 : f32
      %14 = vector.broadcast %cst_10 : f32 to vector<12x32xf32>
      %c0_11 = arith.constant 0 : index
      %c0_12 = arith.constant 0 : index
      %15 = vector.load %arg7[%c0_11, %c0_12] : memref<12x32xf32, #tpu.memory_space<vmem>>, vector<12x32xf32>
      tpu.vector_store %arg7[%c0_11, %c0_12], %14 {strides = array<i32>} : memref<12x32xf32, #tpu.memory_space<vmem>>, vector<12x32xf32>,
    } else {
    }
    %c0 = arith.constant 0 : index
    %c0_1 = arith.constant 0 : index
    %3 = vector.load %arg7[%c0, %c0_1] : memref<12x32xf32, #tpu.memory_space<vmem>>, vector<12x32xf32>
    %c0_2 = arith.constant 0 : index
    %c0_3 = arith.constant 0 : index
    %4 = vector.load %arg3[%c0_2, %c0_3] : memref<12x24xf32, #tpu.memory_space<vmem>>, vector<12x24xf32>
    %5 = arith.truncf %4 : vector<12x24xf32> to vector<12x24xbf16>
    %c0_4 = arith.constant 0 : index
    %c0_5 = arith.constant 0 : index
    %6 = vector.load %arg4[%c0_4, %c0_5] : memref<24x32xf32, #tpu.memory_space<vmem>>, vector<24x32xf32>
    %7 = arith.truncf %6 : vector<24x32xf32> to vector<24x32xbf16>
    %cst = arith.constant dense<0.000000e+00> : vector<12x32xf32>
    %8 = tpu.matmul %5, %7, %cst {dimension_numbers = #tpu.dot_dimension_numbers<[1], [0], [0], [1], [0, 0, 1, 1], [], []>} : vector<12x24xbf16>, vector<24x32xbf16>, vector<12x32xf32> -> vector<12x32xf32>
    %9 = arith.addf %3, %8 : vector<12x32xf32>
    %c0_6 = arith.constant 0 : index
    %c0_7 = arith.constant 0 : index
    %10 = vector.load %arg7[%c0_6, %c0_7] : memref<12x32xf32, #tpu.memory_space<vmem>>, vector<12x32xf32>
    tpu.vector_store %arg7[%c0_6, %c0_7], %9 {strides = array<i32>} : memref<12x32xf32, #tpu.memory_space<vmem>>, vector<12x32xf32>,
    %c0_i32_8 = arith.constant 0 : i32
    %11 = arith.cmpi eq, %arg2, %c0_i32_8 : i32
    %12 = arith.extui %11 : i1 to i32
    %c0_i32_9 = arith.constant 0 : i32
    %13 = arith.cmpi ne, %12, %c0_i32_9 : i32
    scf.if %13 {
      %c0_10 = arith.constant 0 : index
      %c0_11 = arith.constant 0 : index
      %14 = vector.load %arg7[%c0_10, %c0_11] : memref<12x32xf32, #tpu.memory_space<vmem>>, vector<12x32xf32>
      %c0_12 = arith.constant 0 : index
      %c0_13 = arith.constant 0 : index
      %15 = vector.load %arg5[%c0_12, %c0_13] : memref<1x32xf32, #tpu.memory_space<vmem>>, vector<1x32xf32>
      %16 = vector.broadcast %15 : vector<1x32xf32> to vector<12x32xf32>
      %17 = arith.addf %14, %16 : vector<12x32xf32>
      %c0_14 = arith.constant 0 : index
      %c0_15 = arith.constant 0 : index
      %18 = vector.load %arg6[%c0_14, %c0_15] : memref<12x32xf32, #tpu.memory_space<vmem>>, vector<12x32xf32>
      tpu.vector_store %arg6[%c0_14, %c0_15], %17 {strides = array<i32>} : memref<12x32xf32, #tpu.memory_space<vmem>>, vector<12x32xf32>,
    } else {
    }
    return
  }
  func.func @transform_0(%arg0: i32, %arg1: i32, %arg2: i32) -> (i32, i32) {
    %c0_i32 = arith.constant 0 : i32
    return %arg0, %arg2 : i32, i32
  }
  func.func @transform_1(%arg0: i32, %arg1: i32, %arg2: i32) -> (i32, i32) {
    %c0_i32 = arith.constant 0 : i32
    return %arg2, %arg1 : i32, i32
  }
  func.func @transform_2(%arg0: i32, %arg1: i32, %arg2: i32) -> (i32, i32) {
    %c0_i32 = arith.constant 0 : i32
    %c0_i32_0 = arith.constant 0 : i32
    return %c0_i32, %arg1 : i32, i32
  }
  func.func @transform_3(%arg0: i32, %arg1: i32, %arg2: i32) -> (i32, i32) {
    %c0_i32 = arith.constant 0 : i32
    return %arg0, %arg1 : i32, i32
  }
}

module attributes {stable_mosaic.version = 11 : i64} {
  func.func @_ln_mm_kernel(%arg0: i32, %arg1: i32, %arg2: memref<22x32xf32, #tpu.memory_space<vmem>>, %arg3: memref<1x32xf32, #tpu.memory_space<vmem>>, %arg4: memref<1x32xf32, #tpu.memory_space<vmem>>, %arg5: memref<32x96xf32, #tpu.memory_space<vmem>>, %arg6: memref<1x96xf32, #tpu.memory_space<vmem>>, %arg7: memref<22x96xf32, #tpu.memory_space<vmem>>) attributes {dimension_semantics = [#tpu.dimension_semantics<parallel>, #tpu.dimension_semantics<parallel>], iteration_bounds = array<i64: 1, 1>, scalar_prefetch = 0 : i64, scratch_operands = 0 : i64, tpu.core_type = #tpu.core_type<tc>, window_params = [{transform_indices = @transform_0, window_bounds = array<i64: 22, 32>}, {pipeline_mode = #tpu.pipeline_mode<synchronous>, transform_indices = @transform_1, window_bounds = array<i64: 1, 32>}, {pipeline_mode = #tpu.pipeline_mode<synchronous>, transform_indices = @transform_2, window_bounds = array<i64: 1, 32>}, {transform_indices = @transform_3, window_bounds = array<i64: 32, 96>}, {transform_indices = @transform_4, window_bounds = array<i64: 1, 96>}, {transform_indices = @transform_5, window_bounds = array<i64: 22, 96>}]} {
    %c0 = arith.constant 0 : index
    %c0_0 = arith.constant 0 : index
    %0 = vector.load %arg2[%c0, %c0_0] : memref<22x32xf32, #tpu.memory_space<vmem>>, vector<22x32xf32>
    %cst = arith.constant dense<0.000000e+00> : vector<22xf32>
    %1 = vector.multi_reduction <add>, %0, %cst [1] : vector<22x32xf32> to vector<22xf32>
    %2 = vector.shape_cast %1 : vector<22xf32> to vector<22x1xf32>
    %cst_1 = arith.constant 3.200000e+01 : f32
    %3 = vector.broadcast %cst_1 : f32 to vector<22x1xf32>
    %4 = arith.divf %2, %3 : vector<22x1xf32>
    %5 = vector.broadcast %4 : vector<22x1xf32> to vector<22x32xf32>
    %6 = arith.subf %0, %5 : vector<22x32xf32>
    %7 = arith.mulf %6, %6 : vector<22x32xf32>
    %cst_2 = arith.constant dense<0.000000e+00> : vector<22xf32>
    %8 = vector.multi_reduction <add>, %7, %cst_2 [1] : vector<22x32xf32> to vector<22xf32>
    %9 = vector.shape_cast %8 : vector<22xf32> to vector<22x1xf32>
    %cst_3 = arith.constant 3.200000e+01 : f32
    %10 = vector.broadcast %cst_3 : f32 to vector<22x1xf32>
    %11 = arith.divf %9, %10 : vector<22x1xf32>
    %12 = vector.broadcast %4 : vector<22x1xf32> to vector<22x32xf32>
    %13 = arith.subf %0, %12 : vector<22x32xf32>
    %cst_4 = arith.constant 9.99999974E-6 : f32
    %14 = vector.broadcast %cst_4 : f32 to vector<22x1xf32>
    %15 = arith.addf %11, %14 : vector<22x1xf32>
    %16 = math.rsqrt %15 : vector<22x1xf32>
    %17 = vector.broadcast %16 : vector<22x1xf32> to vector<22x32xf32>
    %18 = arith.mulf %13, %17 : vector<22x32xf32>
    %c0_5 = arith.constant 0 : index
    %c0_6 = arith.constant 0 : index
    %19 = vector.load %arg3[%c0_5, %c0_6] : memref<1x32xf32, #tpu.memory_space<vmem>>, vector<1x32xf32>
    %20 = vector.broadcast %19 : vector<1x32xf32> to vector<22x32xf32>
    %21 = arith.mulf %18, %20 : vector<22x32xf32>
    %c0_7 = arith.constant 0 : index
    %c0_8 = arith.constant 0 : index
    %22 = vector.load %arg4[%c0_7, %c0_8] : memref<1x32xf32, #tpu.memory_space<vmem>>, vector<1x32xf32>
    %23 = vector.broadcast %22 : vector<1x32xf32> to vector<22x32xf32>
    %24 = arith.addf %21, %23 : vector<22x32xf32>
    %25 = arith.truncf %24 : vector<22x32xf32> to vector<22x32xbf16>
    %c0_9 = arith.constant 0 : index
    %c0_10 = arith.constant 0 : index
    %26 = vector.load %arg5[%c0_9, %c0_10] : memref<32x96xf32, #tpu.memory_space<vmem>>, vector<32x96xf32>
    %27 = arith.truncf %26 : vector<32x96xf32> to vector<32x96xbf16>
    %cst_11 = arith.constant dense<0.000000e+00> : vector<22x96xf32>
    %28 = tpu.matmul %25, %27, %cst_11 {dimension_numbers = #tpu.dot_dimension_numbers<[1], [0], [0], [1], [0, 0, 1, 1], [], []>} : vector<22x32xbf16>, vector<32x96xbf16>, vector<22x96xf32> -> vector<22x96xf32>
    %c0_12 = arith.constant 0 : index
    %c0_13 = arith.constant 0 : index
    %29 = vector.load %arg6[%c0_12, %c0_13] : memref<1x96xf32, #tpu.memory_space<vmem>>, vector<1x96xf32>
    %30 = vector.broadcast %29 : vector<1x96xf32> to vector<22x96xf32>
    %31 = arith.addf %28, %30 : vector<22x96xf32>
    %c0_14 = arith.constant 0 : index
    %c0_15 = arith.constant 0 : index
    %32 = vector.load %arg7[%c0_14, %c0_15] : memref<22x96xf32, #tpu.memory_space<vmem>>, vector<22x96xf32>
    tpu.vector_store %arg7[%c0_14, %c0_15], %31 {strides = array<i32>} : memref<22x96xf32, #tpu.memory_space<vmem>>, vector<22x96xf32>,
    return
  }
  func.func @transform_0(%arg0: i32, %arg1: i32) -> (i32, i32) {
    %c0_i32 = arith.constant 0 : i32
    %c0_i32_0 = arith.constant 0 : i32
    return %arg0, %c0_i32 : i32, i32
  }
  func.func @transform_1(%arg0: i32, %arg1: i32) -> (i32, i32) {
    %c0_i32 = arith.constant 0 : i32
    %c0_i32_0 = arith.constant 0 : i32
    %c0_i32_1 = arith.constant 0 : i32
    return %c0_i32, %c0_i32_0 : i32, i32
  }
  func.func @transform_2(%arg0: i32, %arg1: i32) -> (i32, i32) {
    %c0_i32 = arith.constant 0 : i32
    %c0_i32_0 = arith.constant 0 : i32
    %c0_i32_1 = arith.constant 0 : i32
    return %c0_i32, %c0_i32_0 : i32, i32
  }
  func.func @transform_3(%arg0: i32, %arg1: i32) -> (i32, i32) {
    %c0_i32 = arith.constant 0 : i32
    %c0_i32_0 = arith.constant 0 : i32
    return %c0_i32, %arg1 : i32, i32
  }
  func.func @transform_4(%arg0: i32, %arg1: i32) -> (i32, i32) {
    %c0_i32 = arith.constant 0 : i32
    %c0_i32_0 = arith.constant 0 : i32
    return %c0_i32, %arg1 : i32, i32
  }
  func.func @transform_5(%arg0: i32, %arg1: i32) -> (i32, i32) {
    %c0_i32 = arith.constant 0 : i32
    return %arg0, %arg1 : i32, i32
  }
}

module attributes {stable_mosaic.version = 11 : i64} {
  func.func @_attn_kernel(%arg0: i32, %arg1: memref<1x11x96xf32, #tpu.memory_space<vmem>>, %arg2: memref<1x11x32xf32, #tpu.memory_space<vmem>>) attributes {dimension_semantics = [#tpu.dimension_semantics<parallel>], iteration_bounds = array<i64: 2>, scalar_prefetch = 0 : i64, scratch_operands = 0 : i64, tpu.core_type = #tpu.core_type<tc>, window_params = [{transform_indices = @transform_0, window_bounds = array<i64: 1, 11, 96>}, {transform_indices = @transform_1, window_bounds = array<i64: 1, 11, 32>}]} {
    %c0 = arith.constant 0 : index
    %c0_0 = arith.constant 0 : index
    %c0_1 = arith.constant 0 : index
    %0 = vector.load %arg1[%c0, %c0_0, %c0_1] : memref<1x11x96xf32, #tpu.memory_space<vmem>>, vector<1x11x96xf32>
    %1 = vector.shape_cast %0 : vector<1x11x96xf32> to vector<11x96xf32>
    %2 = vector.extract_strided_slice %1 {offsets = [0, 0], sizes = [11, 32], strides = [1, 1]} : vector<11x96xf32> to vector<11x32xf32>
    %cst = arith.constant 0.353553385 : f32
    %3 = vector.broadcast %cst : f32 to vector<11x32xf32>
    %4 = arith.mulf %2, %3 : vector<11x32xf32>
    %5 = vector.extract_strided_slice %1 {offsets = [0, 32], sizes = [11, 32], strides = [1, 1]} : vector<11x96xf32> to vector<11x32xf32>
    %6 = vector.extract_strided_slice %1 {offsets = [0, 64], sizes = [11, 32], strides = [1, 1]} : vector<11x96xf32> to vector<11x32xf32>
    %7 = vector.extract_strided_slice %4 {offsets = [0, 0], sizes = [11, 8], strides = [1, 1]} : vector<11x32xf32> to vector<11x8xf32>
    %8 = arith.truncf %7 : vector<11x8xf32> to vector<11x8xbf16>
    %9 = vector.extract_strided_slice %5 {offsets = [0, 0], sizes = [11, 8], strides = [1, 1]} : vector<11x32xf32> to vector<11x8xf32>
    %10 = arith.truncf %9 : vector<11x8xf32> to vector<11x8xbf16>
    %11 = vector.extract_strided_slice %6 {offsets = [0, 0], sizes = [11, 8], strides = [1, 1]} : vector<11x32xf32> to vector<11x8xf32>
    %12 = arith.truncf %11 : vector<11x8xf32> to vector<11x8xbf16>
    %cst_2 = arith.constant dense<0.000000e+00> : vector<11x11xf32>
    %13 = tpu.matmul %8, %10, %cst_2 {dimension_numbers = #tpu.dot_dimension_numbers<[1], [1], [0], [0], [0, 0, 1, 0], [], []>} : vector<11x8xbf16>, vector<11x8xbf16>, vector<11x11xf32> -> vector<11x11xf32>
    %cst_3 = arith.constant dense<0xFF800000> : vector<11xf32>
    %14 = vector.multi_reduction <maximumf>, %13, %cst_3 [1] : vector<11x11xf32> to vector<11xf32>
    %15 = vector.shape_cast %14 : vector<11xf32> to vector<11x1xf32>
    %16 = vector.broadcast %15 : vector<11x1xf32> to vector<11x11xf32>
    %17 = arith.subf %13, %16 : vector<11x11xf32>
    %18 = math.exp %17 : vector<11x11xf32>
    %cst_4 = arith.constant dense<0.000000e+00> : vector<11xf32>
    %19 = vector.multi_reduction <add>, %18, %cst_4 [1] : vector<11x11xf32> to vector<11xf32>
    %20 = vector.shape_cast %19 : vector<11xf32> to vector<11x1xf32>
    %21 = tpu.reciprocal %20 {approx = true} : vector<11x1xf32> -> vector<11x1xf32>
    %22 = vector.broadcast %21 : vector<11x1xf32> to vector<11x11xf32>
    %23 = arith.mulf %18, %22 : vector<11x11xf32>
    %24 = arith.truncf %23 : vector<11x11xf32> to vector<11x11xbf16>
    %cst_5 = arith.constant dense<0.000000e+00> : vector<11x8xf32>
    %25 = tpu.matmul %24, %12, %cst_5 {dimension_numbers = #tpu.dot_dimension_numbers<[1], [0], [0], [1], [0, 0, 1, 1], [], []>} : vector<11x11xbf16>, vector<11x8xbf16>, vector<11x8xf32> -> vector<11x8xf32>
    %26 = vector.extract_strided_slice %4 {offsets = [0, 8], sizes = [11, 8], strides = [1, 1]} : vector<11x32xf32> to vector<11x8xf32>
    %27 = arith.truncf %26 : vector<11x8xf32> to vector<11x8xbf16>
    %28 = vector.extract_strided_slice %5 {offsets = [0, 8], sizes = [11, 8], strides = [1, 1]} : vector<11x32xf32> to vector<11x8xf32>
    %29 = arith.truncf %28 : vector<11x8xf32> to vector<11x8xbf16>
    %30 = vector.extract_strided_slice %6 {offsets = [0, 8], sizes = [11, 8], strides = [1, 1]} : vector<11x32xf32> to vector<11x8xf32>
    %31 = arith.truncf %30 : vector<11x8xf32> to vector<11x8xbf16>
    %cst_6 = arith.constant dense<0.000000e+00> : vector<11x11xf32>
    %32 = tpu.matmul %27, %29, %cst_6 {dimension_numbers = #tpu.dot_dimension_numbers<[1], [1], [0], [0], [0, 0, 1, 0], [], []>} : vector<11x8xbf16>, vector<11x8xbf16>, vector<11x11xf32> -> vector<11x11xf32>
    %cst_7 = arith.constant dense<0xFF800000> : vector<11xf32>
    %33 = vector.multi_reduction <maximumf>, %32, %cst_7 [1] : vector<11x11xf32> to vector<11xf32>
    %34 = vector.shape_cast %33 : vector<11xf32> to vector<11x1xf32>
    %35 = vector.broadcast %34 : vector<11x1xf32> to vector<11x11xf32>
    %36 = arith.subf %32, %35 : vector<11x11xf32>
    %37 = math.exp %36 : vector<11x11xf32>
    %cst_8 = arith.constant dense<0.000000e+00> : vector<11xf32>
    %38 = vector.multi_reduction <add>, %37, %cst_8 [1] : vector<11x11xf32> to vector<11xf32>
    %39 = vector.shape_cast %38 : vector<11xf32> to vector<11x1xf32>
    %40 = tpu.reciprocal %39 {approx = true} : vector<11x1xf32> -> vector<11x1xf32>
    %41 = vector.broadcast %40 : vector<11x1xf32> to vector<11x11xf32>
    %42 = arith.mulf %37, %41 : vector<11x11xf32>
    %43 = arith.truncf %42 : vector<11x11xf32> to vector<11x11xbf16>
    %cst_9 = arith.constant dense<0.000000e+00> : vector<11x8xf32>
    %44 = tpu.matmul %43, %31, %cst_9 {dimension_numbers = #tpu.dot_dimension_numbers<[1], [0], [0], [1], [0, 0, 1, 1], [], []>} : vector<11x11xbf16>, vector<11x8xbf16>, vector<11x8xf32> -> vector<11x8xf32>
    %45 = vector.extract_strided_slice %4 {offsets = [0, 16], sizes = [11, 8], strides = [1, 1]} : vector<11x32xf32> to vector<11x8xf32>
    %46 = arith.truncf %45 : vector<11x8xf32> to vector<11x8xbf16>
    %47 = vector.extract_strided_slice %5 {offsets = [0, 16], sizes = [11, 8], strides = [1, 1]} : vector<11x32xf32> to vector<11x8xf32>
    %48 = arith.truncf %47 : vector<11x8xf32> to vector<11x8xbf16>
    %49 = vector.extract_strided_slice %6 {offsets = [0, 16], sizes = [11, 8], strides = [1, 1]} : vector<11x32xf32> to vector<11x8xf32>
    %50 = arith.truncf %49 : vector<11x8xf32> to vector<11x8xbf16>
    %cst_10 = arith.constant dense<0.000000e+00> : vector<11x11xf32>
    %51 = tpu.matmul %46, %48, %cst_10 {dimension_numbers = #tpu.dot_dimension_numbers<[1], [1], [0], [0], [0, 0, 1, 0], [], []>} : vector<11x8xbf16>, vector<11x8xbf16>, vector<11x11xf32> -> vector<11x11xf32>
    %cst_11 = arith.constant dense<0xFF800000> : vector<11xf32>
    %52 = vector.multi_reduction <maximumf>, %51, %cst_11 [1] : vector<11x11xf32> to vector<11xf32>
    %53 = vector.shape_cast %52 : vector<11xf32> to vector<11x1xf32>
    %54 = vector.broadcast %53 : vector<11x1xf32> to vector<11x11xf32>
    %55 = arith.subf %51, %54 : vector<11x11xf32>
    %56 = math.exp %55 : vector<11x11xf32>
    %cst_12 = arith.constant dense<0.000000e+00> : vector<11xf32>
    %57 = vector.multi_reduction <add>, %56, %cst_12 [1] : vector<11x11xf32> to vector<11xf32>
    %58 = vector.shape_cast %57 : vector<11xf32> to vector<11x1xf32>
    %59 = tpu.reciprocal %58 {approx = true} : vector<11x1xf32> -> vector<11x1xf32>
    %60 = vector.broadcast %59 : vector<11x1xf32> to vector<11x11xf32>
    %61 = arith.mulf %56, %60 : vector<11x11xf32>
    %62 = arith.truncf %61 : vector<11x11xf32> to vector<11x11xbf16>
    %cst_13 = arith.constant dense<0.000000e+00> : vector<11x8xf32>
    %63 = tpu.matmul %62, %50, %cst_13 {dimension_numbers = #tpu.dot_dimension_numbers<[1], [0], [0], [1], [0, 0, 1, 1], [], []>} : vector<11x11xbf16>, vector<11x8xbf16>, vector<11x8xf32> -> vector<11x8xf32>
    %64 = vector.extract_strided_slice %4 {offsets = [0, 24], sizes = [11, 8], strides = [1, 1]} : vector<11x32xf32> to vector<11x8xf32>
    %65 = arith.truncf %64 : vector<11x8xf32> to vector<11x8xbf16>
    %66 = vector.extract_strided_slice %5 {offsets = [0, 24], sizes = [11, 8], strides = [1, 1]} : vector<11x32xf32> to vector<11x8xf32>
    %67 = arith.truncf %66 : vector<11x8xf32> to vector<11x8xbf16>
    %68 = vector.extract_strided_slice %6 {offsets = [0, 24], sizes = [11, 8], strides = [1, 1]} : vector<11x32xf32> to vector<11x8xf32>
    %69 = arith.truncf %68 : vector<11x8xf32> to vector<11x8xbf16>
    %cst_14 = arith.constant dense<0.000000e+00> : vector<11x11xf32>
    %70 = tpu.matmul %65, %67, %cst_14 {dimension_numbers = #tpu.dot_dimension_numbers<[1], [1], [0], [0], [0, 0, 1, 0], [], []>} : vector<11x8xbf16>, vector<11x8xbf16>, vector<11x11xf32> -> vector<11x11xf32>
    %cst_15 = arith.constant dense<0xFF800000> : vector<11xf32>
    %71 = vector.multi_reduction <maximumf>, %70, %cst_15 [1] : vector<11x11xf32> to vector<11xf32>
    %72 = vector.shape_cast %71 : vector<11xf32> to vector<11x1xf32>
    %73 = vector.broadcast %72 : vector<11x1xf32> to vector<11x11xf32>
    %74 = arith.subf %70, %73 : vector<11x11xf32>
    %75 = math.exp %74 : vector<11x11xf32>
    %cst_16 = arith.constant dense<0.000000e+00> : vector<11xf32>
    %76 = vector.multi_reduction <add>, %75, %cst_16 [1] : vector<11x11xf32> to vector<11xf32>
    %77 = vector.shape_cast %76 : vector<11xf32> to vector<11x1xf32>
    %78 = tpu.reciprocal %77 {approx = true} : vector<11x1xf32> -> vector<11x1xf32>
    %79 = vector.broadcast %78 : vector<11x1xf32> to vector<11x11xf32>
    %80 = arith.mulf %75, %79 : vector<11x11xf32>
    %81 = arith.truncf %80 : vector<11x11xf32> to vector<11x11xbf16>
    %cst_17 = arith.constant dense<0.000000e+00> : vector<11x8xf32>
    %82 = tpu.matmul %81, %69, %cst_17 {dimension_numbers = #tpu.dot_dimension_numbers<[1], [0], [0], [1], [0, 0, 1, 1], [], []>} : vector<11x11xbf16>, vector<11x8xbf16>, vector<11x8xf32> -> vector<11x8xf32>
    %83 = tpu.concatenate %25, %44, %63, %82 in 1 : vector<11x8xf32>, vector<11x8xf32>, vector<11x8xf32>, vector<11x8xf32> -> vector<11x32xf32>
    %c0_18 = arith.constant 0 : index
    %c0_19 = arith.constant 0 : index
    %c0_20 = arith.constant 0 : index
    %84 = vector.load %arg2[%c0_18, %c0_19, %c0_20] : memref<1x11x32xf32, #tpu.memory_space<vmem>>, vector<1x11x32xf32>
    %85 = vector.shape_cast %84 : vector<1x11x32xf32> to vector<11x32xf32>
    %86 = vector.shape_cast %83 : vector<11x32xf32> to vector<1x11x32xf32>
    tpu.vector_store %arg2[%c0_18, %c0_19, %c0_20], %86 {strides = array<i32>} : memref<1x11x32xf32, #tpu.memory_space<vmem>>, vector<1x11x32xf32>,
    return
  }
  func.func @transform_0(%arg0: i32) -> (i32, i32, i32) {
    %c0_i32 = arith.constant 0 : i32
    %c0_i32_0 = arith.constant 0 : i32
    %c0_i32_1 = arith.constant 0 : i32
    return %arg0, %c0_i32, %c0_i32_0 : i32, i32, i32
  }
  func.func @transform_1(%arg0: i32) -> (i32, i32, i32) {
    %c0_i32 = arith.constant 0 : i32
    %c0_i32_0 = arith.constant 0 : i32
    %c0_i32_1 = arith.constant 0 : i32
    return %arg0, %c0_i32, %c0_i32_0 : i32, i32, i32
  }
}

module attributes {stable_mosaic.version = 11 : i64} {
  func.func @_mm_kernel(%arg0: i32, %arg1: i32, %arg2: i32, %arg3: memref<22x32xf32, #tpu.memory_space<vmem>>, %arg4: memref<32x32xf32, #tpu.memory_space<vmem>>, %arg5: memref<1x32xf32, #tpu.memory_space<vmem>>, %arg6: memref<22x32xf32, #tpu.memory_space<vmem>>, %arg7: memref<22x32xf32, #tpu.memory_space<vmem>>, %arg8: memref<22x32xf32, #tpu.memory_space<vmem>>) attributes {dimension_semantics = [#tpu.dimension_semantics<parallel>, #tpu.dimension_semantics<parallel>, #tpu.dimension_semantics<arbitrary>], iteration_bounds = array<i64: 1, 1, 1>, scalar_prefetch = 0 : i64, scratch_operands = 1 : i64, tpu.core_type = #tpu.core_type<tc>, window_params = [{transform_indices = @transform_0, window_bounds = array<i64: 22, 32>}, {transform_indices = @transform_1, window_bounds = array<i64: 32, 32>}, {transform_indices = @transform_2, window_bounds = array<i64: 1, 32>}, {transform_indices = @transform_3, window_bounds = array<i64: 22, 32>}, {transform_indices = @transform_4, window_bounds = array<i64: 22, 32>}]} {
    %c0_i32 = arith.constant 0 : i32
    %0 = arith.cmpi eq, %arg2, %c0_i32 : i32
    %1 = arith.extui %0 : i1 to i32
    %c0_i32_0 = arith.constant 0 : i32
    %2 = arith.cmpi ne, %1, %c0_i32_0 : i32
    scf.if %2 {
      %cst_10 = arith.constant 0.000000e+00 : f32
      %14 = vector.broadcast %cst_10 : f32 to vector<22x32xf32>
      %c0_11 = arith.constant 0 : index
      %c0_12 = arith.constant 0 : index
      %15 = vector.load %arg8[%c0_11, %c0_12] : memref<22x32xf32, #tpu.memory_space<vmem>>, vector<22x32xf32>
      tpu.vector_store %arg8[%c0_11, %c0_12], %14 {strides = array<i32>} : memref<22x32xf32, #tpu.memory_space<vmem>>, vector<22x32xf32>,
    } else {
    }
    %c0 = arith.constant 0 : index
    %c0_1 = arith.constant 0 : index
    %3 = vector.load %arg8[%c0, %c0_1] : memref<22x32xf32, #tpu.memory_space<vmem>>, vector<22x32xf32>
    %c0_2 = arith.constant 0 : index
    %c0_3 = arith.constant 0 : index
    %4 = vector.load %arg3[%c0_2, %c0_3] : memref<22x32xf32, #tpu.memory_space<vmem>>, vector<22x32xf32>
    %5 = arith.truncf %4 : vector<22x32xf32> to vector<22x32xbf16>
    %c0_4 = arith.constant 0 : index
    %c0_5 = arith.constant 0 : index
    %6 = vector.load %arg4[%c0_4, %c0_5] : memref<32x32xf32, #tpu.memory_space<vmem>>, vector<32x32xf32>
    %7 = arith.truncf %6 : vector<32x32xf32> to vector<32x32xbf16>
    %cst = arith.constant dense<0.000000e+00> : vector<22x32xf32>
    %8 = tpu.matmul %5, %7, %cst {dimension_numbers = #tpu.dot_dimension_numbers<[1], [0], [0], [1], [0, 0, 1, 1], [], []>} : vector<22x32xbf16>, vector<32x32xbf16>, vector<22x32xf32> -> vector<22x32xf32>
    %9 = arith.addf %3, %8 : vector<22x32xf32>
    %c0_6 = arith.constant 0 : index
    %c0_7 = arith.constant 0 : index
    %10 = vector.load %arg8[%c0_6, %c0_7] : memref<22x32xf32, #tpu.memory_space<vmem>>, vector<22x32xf32>
    tpu.vector_store %arg8[%c0_6, %c0_7], %9 {strides = array<i32>} : memref<22x32xf32, #tpu.memory_space<vmem>>, vector<22x32xf32>,
    %c0_i32_8 = arith.constant 0 : i32
    %11 = arith.cmpi eq, %arg2, %c0_i32_8 : i32
    %12 = arith.extui %11 : i1 to i32
    %c0_i32_9 = arith.constant 0 : i32
    %13 = arith.cmpi ne, %12, %c0_i32_9 : i32
    scf.if %13 {
      %c0_10 = arith.constant 0 : index
      %c0_11 = arith.constant 0 : index
      %14 = vector.load %arg8[%c0_10, %c0_11] : memref<22x32xf32, #tpu.memory_space<vmem>>, vector<22x32xf32>
      %c0_12 = arith.constant 0 : index
      %c0_13 = arith.constant 0 : index
      %15 = vector.load %arg5[%c0_12, %c0_13] : memref<1x32xf32, #tpu.memory_space<vmem>>, vector<1x32xf32>
      %16 = vector.broadcast %15 : vector<1x32xf32> to vector<22x32xf32>
      %17 = arith.addf %14, %16 : vector<22x32xf32>
      %c0_14 = arith.constant 0 : index
      %c0_15 = arith.constant 0 : index
      %18 = vector.load %arg6[%c0_14, %c0_15] : memref<22x32xf32, #tpu.memory_space<vmem>>, vector<22x32xf32>
      %19 = arith.addf %17, %18 : vector<22x32xf32>
      %c0_16 = arith.constant 0 : index
      %c0_17 = arith.constant 0 : index
      %20 = vector.load %arg7[%c0_16, %c0_17] : memref<22x32xf32, #tpu.memory_space<vmem>>, vector<22x32xf32>
      tpu.vector_store %arg7[%c0_16, %c0_17], %19 {strides = array<i32>} : memref<22x32xf32, #tpu.memory_space<vmem>>, vector<22x32xf32>,
    } else {
    }
    return
  }
  func.func @transform_0(%arg0: i32, %arg1: i32, %arg2: i32) -> (i32, i32) {
    %c0_i32 = arith.constant 0 : i32
    return %arg0, %arg2 : i32, i32
  }
  func.func @transform_1(%arg0: i32, %arg1: i32, %arg2: i32) -> (i32, i32) {
    %c0_i32 = arith.constant 0 : i32
    return %arg2, %arg1 : i32, i32
  }
  func.func @transform_2(%arg0: i32, %arg1: i32, %arg2: i32) -> (i32, i32) {
    %c0_i32 = arith.constant 0 : i32
    %c0_i32_0 = arith.constant 0 : i32
    return %c0_i32, %arg1 : i32, i32
  }
  func.func @transform_3(%arg0: i32, %arg1: i32, %arg2: i32) -> (i32, i32) {
    %c0_i32 = arith.constant 0 : i32
    return %arg0, %arg1 : i32, i32
  }
  func.func @transform_4(%arg0: i32, %arg1: i32, %arg2: i32) -> (i32, i32) {
    %c0_i32 = arith.constant 0 : i32
    return %arg0, %arg1 : i32, i32
  }
}

module attributes {stable_mosaic.version = 11 : i64} {
  func.func @_mm_kernel(%arg0: i32, %arg1: i32, %arg2: i32, %arg3: memref<22x128xf32, #tpu.memory_space<vmem>>, %arg4: memref<128x32xf32, #tpu.memory_space<vmem>>, %arg5: memref<1x32xf32, #tpu.memory_space<vmem>>, %arg6: memref<22x32xf32, #tpu.memory_space<vmem>>, %arg7: memref<22x32xf32, #tpu.memory_space<vmem>>, %arg8: memref<22x32xf32, #tpu.memory_space<vmem>>) attributes {dimension_semantics = [#tpu.dimension_semantics<parallel>, #tpu.dimension_semantics<parallel>, #tpu.dimension_semantics<arbitrary>], iteration_bounds = array<i64: 1, 1, 1>, scalar_prefetch = 0 : i64, scratch_operands = 1 : i64, tpu.core_type = #tpu.core_type<tc>, window_params = [{transform_indices = @transform_0, window_bounds = array<i64: 22, 128>}, {transform_indices = @transform_1, window_bounds = array<i64: 128, 32>}, {transform_indices = @transform_2, window_bounds = array<i64: 1, 32>}, {transform_indices = @transform_3, window_bounds = array<i64: 22, 32>}, {transform_indices = @transform_4, window_bounds = array<i64: 22, 32>}]} {
    %c0_i32 = arith.constant 0 : i32
    %0 = arith.cmpi eq, %arg2, %c0_i32 : i32
    %1 = arith.extui %0 : i1 to i32
    %c0_i32_0 = arith.constant 0 : i32
    %2 = arith.cmpi ne, %1, %c0_i32_0 : i32
    scf.if %2 {
      %cst_10 = arith.constant 0.000000e+00 : f32
      %14 = vector.broadcast %cst_10 : f32 to vector<22x32xf32>
      %c0_11 = arith.constant 0 : index
      %c0_12 = arith.constant 0 : index
      %15 = vector.load %arg8[%c0_11, %c0_12] : memref<22x32xf32, #tpu.memory_space<vmem>>, vector<22x32xf32>
      tpu.vector_store %arg8[%c0_11, %c0_12], %14 {strides = array<i32>} : memref<22x32xf32, #tpu.memory_space<vmem>>, vector<22x32xf32>,
    } else {
    }
    %c0 = arith.constant 0 : index
    %c0_1 = arith.constant 0 : index
    %3 = vector.load %arg8[%c0, %c0_1] : memref<22x32xf32, #tpu.memory_space<vmem>>, vector<22x32xf32>
    %c0_2 = arith.constant 0 : index
    %c0_3 = arith.constant 0 : index
    %4 = vector.load %arg3[%c0_2, %c0_3] : memref<22x128xf32, #tpu.memory_space<vmem>>, vector<22x128xf32>
    %5 = arith.truncf %4 : vector<22x128xf32> to vector<22x128xbf16>
    %c0_4 = arith.constant 0 : index
    %c0_5 = arith.constant 0 : index
    %6 = vector.load %arg4[%c0_4, %c0_5] : memref<128x32xf32, #tpu.memory_space<vmem>>, vector<128x32xf32>
    %7 = arith.truncf %6 : vector<128x32xf32> to vector<128x32xbf16>
    %cst = arith.constant dense<0.000000e+00> : vector<22x32xf32>
    %8 = tpu.matmul %5, %7, %cst {dimension_numbers = #tpu.dot_dimension_numbers<[1], [0], [0], [1], [0, 0, 1, 1], [], []>} : vector<22x128xbf16>, vector<128x32xbf16>, vector<22x32xf32> -> vector<22x32xf32>
    %9 = arith.addf %3, %8 : vector<22x32xf32>
    %c0_6 = arith.constant 0 : index
    %c0_7 = arith.constant 0 : index
    %10 = vector.load %arg8[%c0_6, %c0_7] : memref<22x32xf32, #tpu.memory_space<vmem>>, vector<22x32xf32>
    tpu.vector_store %arg8[%c0_6, %c0_7], %9 {strides = array<i32>} : memref<22x32xf32, #tpu.memory_space<vmem>>, vector<22x32xf32>,
    %c0_i32_8 = arith.constant 0 : i32
    %11 = arith.cmpi eq, %arg2, %c0_i32_8 : i32
    %12 = arith.extui %11 : i1 to i32
    %c0_i32_9 = arith.constant 0 : i32
    %13 = arith.cmpi ne, %12, %c0_i32_9 : i32
    scf.if %13 {
      %c0_10 = arith.constant 0 : index
      %c0_11 = arith.constant 0 : index
      %14 = vector.load %arg8[%c0_10, %c0_11] : memref<22x32xf32, #tpu.memory_space<vmem>>, vector<22x32xf32>
      %c0_12 = arith.constant 0 : index
      %c0_13 = arith.constant 0 : index
      %15 = vector.load %arg5[%c0_12, %c0_13] : memref<1x32xf32, #tpu.memory_space<vmem>>, vector<1x32xf32>
      %16 = vector.broadcast %15 : vector<1x32xf32> to vector<22x32xf32>
      %17 = arith.addf %14, %16 : vector<22x32xf32>
      %c0_14 = arith.constant 0 : index
      %c0_15 = arith.constant 0 : index
      %18 = vector.load %arg6[%c0_14, %c0_15] : memref<22x32xf32, #tpu.memory_space<vmem>>, vector<22x32xf32>
      %19 = arith.addf %17, %18 : vector<22x32xf32>
      %c0_16 = arith.constant 0 : index
      %c0_17 = arith.constant 0 : index
      %20 = vector.load %arg7[%c0_16, %c0_17] : memref<22x32xf32, #tpu.memory_space<vmem>>, vector<22x32xf32>
      tpu.vector_store %arg7[%c0_16, %c0_17], %19 {strides = array<i32>} : memref<22x32xf32, #tpu.memory_space<vmem>>, vector<22x32xf32>,
    } else {
    }
    return
  }
  func.func @transform_0(%arg0: i32, %arg1: i32, %arg2: i32) -> (i32, i32) {
    %c0_i32 = arith.constant 0 : i32
    return %arg0, %arg2 : i32, i32
  }
  func.func @transform_1(%arg0: i32, %arg1: i32, %arg2: i32) -> (i32, i32) {
    %c0_i32 = arith.constant 0 : i32
    return %arg2, %arg1 : i32, i32
  }
  func.func @transform_2(%arg0: i32, %arg1: i32, %arg2: i32) -> (i32, i32) {
    %c0_i32 = arith.constant 0 : i32
    %c0_i32_0 = arith.constant 0 : i32
    return %c0_i32, %arg1 : i32, i32
  }
  func.func @transform_3(%arg0: i32, %arg1: i32, %arg2: i32) -> (i32, i32) {
    %c0_i32 = arith.constant 0 : i32
    return %arg0, %arg1 : i32, i32
  }
  func.func @transform_4(%arg0: i32, %arg1: i32, %arg2: i32) -> (i32, i32) {
    %c0_i32 = arith.constant 0 : i32
    return %arg0, %arg1 : i32, i32
  }
}

module attributes {stable_mosaic.version = 11 : i64} {
  func.func @_ln_mm_kernel(%arg0: i32, %arg1: i32, %arg2: memref<22x32xf32, #tpu.memory_space<vmem>>, %arg3: memref<1x32xf32, #tpu.memory_space<vmem>>, %arg4: memref<1x32xf32, #tpu.memory_space<vmem>>, %arg5: memref<32x128xf32, #tpu.memory_space<vmem>>, %arg6: memref<1x128xf32, #tpu.memory_space<vmem>>, %arg7: memref<22x128xf32, #tpu.memory_space<vmem>>) attributes {dimension_semantics = [#tpu.dimension_semantics<parallel>, #tpu.dimension_semantics<parallel>], iteration_bounds = array<i64: 1, 1>, scalar_prefetch = 0 : i64, scratch_operands = 0 : i64, tpu.core_type = #tpu.core_type<tc>, window_params = [{transform_indices = @transform_0, window_bounds = array<i64: 22, 32>}, {pipeline_mode = #tpu.pipeline_mode<synchronous>, transform_indices = @transform_1, window_bounds = array<i64: 1, 32>}, {pipeline_mode = #tpu.pipeline_mode<synchronous>, transform_indices = @transform_2, window_bounds = array<i64: 1, 32>}, {transform_indices = @transform_3, window_bounds = array<i64: 32, 128>}, {transform_indices = @transform_4, window_bounds = array<i64: 1, 128>}, {transform_indices = @transform_5, window_bounds = array<i64: 22, 128>}]} {
    %c0 = arith.constant 0 : index
    %c0_0 = arith.constant 0 : index
    %0 = vector.load %arg2[%c0, %c0_0] : memref<22x32xf32, #tpu.memory_space<vmem>>, vector<22x32xf32>
    %cst = arith.constant dense<0.000000e+00> : vector<22xf32>
    %1 = vector.multi_reduction <add>, %0, %cst [1] : vector<22x32xf32> to vector<22xf32>
    %2 = vector.shape_cast %1 : vector<22xf32> to vector<22x1xf32>
    %cst_1 = arith.constant 3.200000e+01 : f32
    %3 = vector.broadcast %cst_1 : f32 to vector<22x1xf32>
    %4 = arith.divf %2, %3 : vector<22x1xf32>
    %5 = vector.broadcast %4 : vector<22x1xf32> to vector<22x32xf32>
    %6 = arith.subf %0, %5 : vector<22x32xf32>
    %7 = arith.mulf %6, %6 : vector<22x32xf32>
    %cst_2 = arith.constant dense<0.000000e+00> : vector<22xf32>
    %8 = vector.multi_reduction <add>, %7, %cst_2 [1] : vector<22x32xf32> to vector<22xf32>
    %9 = vector.shape_cast %8 : vector<22xf32> to vector<22x1xf32>
    %cst_3 = arith.constant 3.200000e+01 : f32
    %10 = vector.broadcast %cst_3 : f32 to vector<22x1xf32>
    %11 = arith.divf %9, %10 : vector<22x1xf32>
    %12 = vector.broadcast %4 : vector<22x1xf32> to vector<22x32xf32>
    %13 = arith.subf %0, %12 : vector<22x32xf32>
    %cst_4 = arith.constant 9.99999974E-6 : f32
    %14 = vector.broadcast %cst_4 : f32 to vector<22x1xf32>
    %15 = arith.addf %11, %14 : vector<22x1xf32>
    %16 = math.rsqrt %15 : vector<22x1xf32>
    %17 = vector.broadcast %16 : vector<22x1xf32> to vector<22x32xf32>
    %18 = arith.mulf %13, %17 : vector<22x32xf32>
    %c0_5 = arith.constant 0 : index
    %c0_6 = arith.constant 0 : index
    %19 = vector.load %arg3[%c0_5, %c0_6] : memref<1x32xf32, #tpu.memory_space<vmem>>, vector<1x32xf32>
    %20 = vector.broadcast %19 : vector<1x32xf32> to vector<22x32xf32>
    %21 = arith.mulf %18, %20 : vector<22x32xf32>
    %c0_7 = arith.constant 0 : index
    %c0_8 = arith.constant 0 : index
    %22 = vector.load %arg4[%c0_7, %c0_8] : memref<1x32xf32, #tpu.memory_space<vmem>>, vector<1x32xf32>
    %23 = vector.broadcast %22 : vector<1x32xf32> to vector<22x32xf32>
    %24 = arith.addf %21, %23 : vector<22x32xf32>
    %25 = arith.truncf %24 : vector<22x32xf32> to vector<22x32xbf16>
    %c0_9 = arith.constant 0 : index
    %c0_10 = arith.constant 0 : index
    %26 = vector.load %arg5[%c0_9, %c0_10] : memref<32x128xf32, #tpu.memory_space<vmem>>, vector<32x128xf32>
    %27 = arith.truncf %26 : vector<32x128xf32> to vector<32x128xbf16>
    %cst_11 = arith.constant dense<0.000000e+00> : vector<22x128xf32>
    %28 = tpu.matmul %25, %27, %cst_11 {dimension_numbers = #tpu.dot_dimension_numbers<[1], [0], [0], [1], [0, 0, 1, 1], [], []>} : vector<22x32xbf16>, vector<32x128xbf16>, vector<22x128xf32> -> vector<22x128xf32>
    %c0_12 = arith.constant 0 : index
    %c0_13 = arith.constant 0 : index
    %29 = vector.load %arg6[%c0_12, %c0_13] : memref<1x128xf32, #tpu.memory_space<vmem>>, vector<1x128xf32>
    %30 = vector.broadcast %29 : vector<1x128xf32> to vector<22x128xf32>
    %31 = arith.addf %28, %30 : vector<22x128xf32>
    %32 = arith.mulf %31, %31 : vector<22x128xf32>
    %33 = arith.mulf %31, %32 : vector<22x128xf32>
    %cst_14 = arith.constant 4.471500e-02 : f32
    %34 = vector.broadcast %cst_14 : f32 to vector<22x128xf32>
    %35 = arith.mulf %34, %33 : vector<22x128xf32>
    %36 = arith.addf %31, %35 : vector<22x128xf32>
    %cst_15 = arith.constant 0.797884583 : f32
    %37 = vector.broadcast %cst_15 : f32 to vector<22x128xf32>
    %38 = arith.mulf %37, %36 : vector<22x128xf32>
    %39 = math.tanh %38 : vector<22x128xf32>
    %cst_16 = arith.constant 1.000000e+00 : f32
    %40 = vector.broadcast %cst_16 : f32 to vector<22x128xf32>
    %41 = arith.addf %40, %39 : vector<22x128xf32>
    %cst_17 = arith.constant 5.000000e-01 : f32
    %42 = vector.broadcast %cst_17 : f32 to vector<22x128xf32>
    %43 = arith.mulf %42, %41 : vector<22x128xf32>
    %44 = arith.mulf %31, %43 : vector<22x128xf32>
    %c0_18 = arith.constant 0 : index
    %c0_19 = arith.constant 0 : index
    %45 = vector.load %arg7[%c0_18, %c0_19] : memref<22x128xf32, #tpu.memory_space<vmem>>, vector<22x128xf32>
    tpu.vector_store %arg7[%c0_18, %c0_19], %44 {strides = array<i32>} : memref<22x128xf32, #tpu.memory_space<vmem>>, vector<22x128xf32>,
    return
  }
  func.func @transform_0(%arg0: i32, %arg1: i32) -> (i32, i32) {
    %c0_i32 = arith.constant 0 : i32
    %c0_i32_0 = arith.constant 0 : i32
    return %arg0, %c0_i32 : i32, i32
  }
  func.func @transform_1(%arg0: i32, %arg1: i32) -> (i32, i32) {
    %c0_i32 = arith.constant 0 : i32
    %c0_i32_0 = arith.constant 0 : i32
    %c0_i32_1 = arith.constant 0 : i32
    return %c0_i32, %c0_i32_0 : i32, i32
  }
  func.func @transform_2(%arg0: i32, %arg1: i32) -> (i32, i32) {
    %c0_i32 = arith.constant 0 : i32
    %c0_i32_0 = arith.constant 0 : i32
    %c0_i32_1 = arith.constant 0 : i32
    return %c0_i32, %c0_i32_0 : i32, i32
  }
  func.func @transform_3(%arg0: i32, %arg1: i32) -> (i32, i32) {
    %c0_i32 = arith.constant 0 : i32
    %c0_i32_0 = arith.constant 0 : i32
    return %c0_i32, %arg1 : i32, i32
  }
  func.func @transform_4(%arg0: i32, %arg1: i32) -> (i32, i32) {
    %c0_i32 = arith.constant 0 : i32
    %c0_i32_0 = arith.constant 0 : i32
    return %c0_i32, %arg1 : i32, i32
  }
  func.func @transform_5(%arg0: i32, %arg1: i32) -> (i32, i32) {
    %c0_i32 = arith.constant 0 : i32
    return %arg0, %arg1 : i32, i32
  }
}

module attributes {stable_mosaic.version = 11 : i64} {
  func.func @_ln_kernel(%arg0: i32, %arg1: memref<22x32xf32, #tpu.memory_space<vmem>>, %arg2: memref<1x32xf32, #tpu.memory_space<vmem>>, %arg3: memref<1x32xf32, #tpu.memory_space<vmem>>, %arg4: memref<22x32xf32, #tpu.memory_space<vmem>>) attributes {dimension_semantics = [#tpu.dimension_semantics<parallel>], iteration_bounds = array<i64: 1>, scalar_prefetch = 0 : i64, scratch_operands = 0 : i64, tpu.core_type = #tpu.core_type<tc>, window_params = [{transform_indices = @transform_0, window_bounds = array<i64: 22, 32>}, {pipeline_mode = #tpu.pipeline_mode<synchronous>, transform_indices = @transform_1, window_bounds = array<i64: 1, 32>}, {pipeline_mode = #tpu.pipeline_mode<synchronous>, transform_indices = @transform_2, window_bounds = array<i64: 1, 32>}, {transform_indices = @transform_3, window_bounds = array<i64: 22, 32>}]} {
    %c0 = arith.constant 0 : index
    %c0_0 = arith.constant 0 : index
    %0 = vector.load %arg1[%c0, %c0_0] : memref<22x32xf32, #tpu.memory_space<vmem>>, vector<22x32xf32>
    %cst = arith.constant dense<0.000000e+00> : vector<22xf32>
    %1 = vector.multi_reduction <add>, %0, %cst [1] : vector<22x32xf32> to vector<22xf32>
    %2 = vector.shape_cast %1 : vector<22xf32> to vector<22x1xf32>
    %cst_1 = arith.constant 3.200000e+01 : f32
    %3 = vector.broadcast %cst_1 : f32 to vector<22x1xf32>
    %4 = arith.divf %2, %3 : vector<22x1xf32>
    %5 = vector.broadcast %4 : vector<22x1xf32> to vector<22x32xf32>
    %6 = arith.subf %0, %5 : vector<22x32xf32>
    %7 = arith.mulf %6, %6 : vector<22x32xf32>
    %cst_2 = arith.constant dense<0.000000e+00> : vector<22xf32>
    %8 = vector.multi_reduction <add>, %7, %cst_2 [1] : vector<22x32xf32> to vector<22xf32>
    %9 = vector.shape_cast %8 : vector<22xf32> to vector<22x1xf32>
    %cst_3 = arith.constant 3.200000e+01 : f32
    %10 = vector.broadcast %cst_3 : f32 to vector<22x1xf32>
    %11 = arith.divf %9, %10 : vector<22x1xf32>
    %12 = vector.broadcast %4 : vector<22x1xf32> to vector<22x32xf32>
    %13 = arith.subf %0, %12 : vector<22x32xf32>
    %cst_4 = arith.constant 9.99999974E-6 : f32
    %14 = vector.broadcast %cst_4 : f32 to vector<22x1xf32>
    %15 = arith.addf %11, %14 : vector<22x1xf32>
    %16 = math.rsqrt %15 : vector<22x1xf32>
    %17 = vector.broadcast %16 : vector<22x1xf32> to vector<22x32xf32>
    %18 = arith.mulf %13, %17 : vector<22x32xf32>
    %c0_5 = arith.constant 0 : index
    %c0_6 = arith.constant 0 : index
    %19 = vector.load %arg2[%c0_5, %c0_6] : memref<1x32xf32, #tpu.memory_space<vmem>>, vector<1x32xf32>
    %20 = vector.broadcast %19 : vector<1x32xf32> to vector<22x32xf32>
    %21 = arith.mulf %18, %20 : vector<22x32xf32>
    %c0_7 = arith.constant 0 : index
    %c0_8 = arith.constant 0 : index
    %22 = vector.load %arg3[%c0_7, %c0_8] : memref<1x32xf32, #tpu.memory_space<vmem>>, vector<1x32xf32>
    %23 = vector.broadcast %22 : vector<1x32xf32> to vector<22x32xf32>
    %24 = arith.addf %21, %23 : vector<22x32xf32>
    %c0_9 = arith.constant 0 : index
    %c0_10 = arith.constant 0 : index
    %25 = vector.load %arg4[%c0_9, %c0_10] : memref<22x32xf32, #tpu.memory_space<vmem>>, vector<22x32xf32>
    tpu.vector_store %arg4[%c0_9, %c0_10], %24 {strides = array<i32>} : memref<22x32xf32, #tpu.memory_space<vmem>>, vector<22x32xf32>,
    return
  }
  func.func @transform_0(%arg0: i32) -> (i32, i32) {
    %c0_i32 = arith.constant 0 : i32
    %c0_i32_0 = arith.constant 0 : i32
    return %arg0, %c0_i32 : i32, i32
  }
  func.func @transform_1(%arg0: i32) -> (i32, i32) {
    %c0_i32 = arith.constant 0 : i32
    %c0_i32_0 = arith.constant 0 : i32
    %c0_i32_1 = arith.constant 0 : i32
    return %c0_i32, %c0_i32_0 : i32, i32
  }
  func.func @transform_2(%arg0: i32) -> (i32, i32) {
    %c0_i32 = arith.constant 0 : i32
    %c0_i32_0 = arith.constant 0 : i32
    %c0_i32_1 = arith.constant 0 : i32
    return %c0_i32, %c0_i32_0 : i32, i32
  }
  func.func @transform_3(%arg0: i32) -> (i32, i32) {
    %c0_i32 = arith.constant 0 : i32
    %c0_i32_0 = arith.constant 0 : i32
    return %arg0, %c0_i32 : i32, i32
  }
}

</mosaic_0001>

<bundles_post_ra>
// kernel: predictor_forward.14
= control target key start
LH: loop header
LB: loop body
LE: loop exit
PB: predicated region body
PF: predicated region fallthrough
CT: control target
= control target key end

     0   :  { %vm19_vm0 = vcmask 254976   ;;  %v106_v0 = vmov 0.0   ;;  %vm30_vm1 = vcmask 1043456   ;;  %vm107_vm2 = vmmov 0   ;;  %s143_s1 = inlined_call_operand.vmem [shape: f32[8,32], index: 1, kind: input, shape index: {}]   ;;  %s144_s0 = inlined_call_operand.vmem [shape: f32[2,8], index: 0, kind: input, shape index: {}]   ;;  %s145_s2 = inlined_call_operand.vmem [shape: f32[1,32], index: 2, kind: input, shape index: {}]   ;;  %s146_s3 = inlined_call_operand.vmem [shape: f32[2,32], index: 3, kind: output, shape index: {}]  }
   0x1   :  { %20 = vst.msk [vmem:[#allocation2] sm:$0x3] %vm19_vm0, %v106_v0  ;;  %98 = vmatprep.subr.bf16.mxu0 %v106_v0  ;;  %v24_v1 = vld [vmem:[%s143_s1] sm:$0xff]  ;;  %100 = vmatprep.mubr.msk.bf16.mxu0 %vm107_vm2, %v106_v0  ;;  %vm26_vm3 = vcmask 64512  }
   0x2   :  { %v22_v2 = vld [vmem:[%s144_s0] sm:$0x3]  ;;  %v25_v3 = vpack.c.bf16 %v24_v1, %v24_v1 }
   0x3   :  { %v23_v5 = vpack.c.bf16 %v22_v2, %v22_v2  ;;  %v95_v12 = vld [vmem:[%s145_s2] ss:$0 sm:$0xff] }
   0x4   :  { %v32_v4 = vsel %vm30_vm1, %v25_v3, 0 }
   0x5   :  { %99 = vmatpush3.bf16.msra.mxu0 %v32_v4 }
   0x8   :  { %101 = vmatmul.mubr.msk.bf16.vlgmr.msra.gmra.mrb[0].mxu0 %vm26_vm3, %v23_v5  ;;  %v21_v6 = vld [vmem:[#allocation2] sm:$0x3] }
  0xdb   :  { %v68_v7 = vpop.f32.mrb[0].mxu0 }
  0xdc   :  { %v74_v8 = vadd.f32 %v68_v7, %v21_v6  ;;  %v102_v9 = vpop.f32.mrb[1].mxu0 }
  0xdd   :  { %v71_v10 = vpop.f32.mrb[2].mxu0 }
  0xde   :  { %76 = vst.msk [vmem:[#allocation2] sm:$0x3] %vm19_vm0, %v74_v8  ;;  %v103_v11 = vpop.f32.mrb[3].mxu0 }
  0xe5   :  { %v80_v13 = vld [vmem:[#allocation2] sm:$0x3] }
  0xe6   :  { %v88_v14 = vadd.f32 %v95_v12, %v80_v13 }
  0xe8   :  { %89 = vst.msk [vmem:[%s146_s3] sm:$0x3] %vm19_vm0, %v88_v14 }

// kernel: predictor_forward.13
= control target key start
LH: loop header
LB: loop body
LE: loop exit
PB: predicated region body
PF: predicated region fallthrough
CT: control target
= control target key end

     0   :  { %v123_v0 = vmov 0.0   ;;  %vm124_vm0 = vmmov 0   ;;  %vm19_vm1 = vcmask 261120   ;;  %vm37_vm2 = vcmask 1043456   ;;  %s175_s1 = inlined_call_operand.vmem [shape: f32[24,32], index: 1, kind: input, shape index: {}]   ;;  %s176_s0 = inlined_call_operand.vmem [shape: f32[12,24], index: 0, kind: input, shape index: {}]   ;;  %s177_s2 = inlined_call_operand.vmem [shape: f32[1,32], index: 2, kind: input, shape index: {}]   ;;  %s178_s3 = inlined_call_operand.vmem [shape: f32[12,32], index: 3, kind: output, shape index: {}]  }
   0x1   :  { %113 = vmatprep.subr.bf16.mxu0 %v123_v0  ;;  %v28_v1 = vld [vmem:[%s175_s1] sm:$0xff]  ;;  %v29_v2 = vld [vmem:[%s175_s1 + $0x8] sm:$0xff]  ;;  %v30_v3 = vld [vmem:[%s175_s1 + $0x10] sm:$0xff]  ;;  %117 = vmatprep.mubr.msk.bf16.mxu0 %vm124_vm0, %v123_v0  ;;  %20 = vst.msk [vmem:[#allocation2] sm:$0xff] %vm19_vm1, %v123_v0  ;;  %vm33_vm3 = vcmask 195584   ;;  %vm21_vm4 = vcmask 257024  }
   0x2   :  { %v31_v4 = vpack.c.bf16 %v29_v2, %v28_v1  ;;  %v32_v5 = vpack.c.bf16 %v30_v3, %v30_v3  ;;  %v25_v6 = vld [vmem:[%s176_s0] sm:$0xff]  ;;  %v26_v7 = vld [vmem:[%s176_s0 + $0x8] sm:$0xf]  ;;  %22 = vst.msk [vmem:[#allocation2 + $0x8] sm:$0xf] %vm21_vm4, %v123_v0 }
   0x3   :  { %v27_v9 = vpack.c.bf16 %v26_v7, %v25_v6  ;;  %v109_v18 = vld [vmem:[%s177_s2] ss:$0 sm:$0xff] }
   0x4   :  { %114 = vmatpush3.bf16.msra.mxu0 %v31_v4  ;;  %v39_v8 = vsel %vm37_vm2, %v32_v5, 0 }
   0x5   :  { %115 = vmatprep.subr.bf16.mxu0 %v123_v0 }
   0x8   :  { %116 = vmatpush3.bf16.msra.mxu0 %v39_v8  ;;  %v23_v10 = vld [vmem:[#allocation2] sm:$0xff] }
   0x9   :  { %v24_v12 = vld [vmem:[#allocation2 + $0x8] sm:$0xf] }
   0xb   :  { %118 = vmatmul.mubr.msk.bf16.vlgmr.msra.gmra.mrb[0].mxu0 %vm33_vm3, %v27_v9 }
  0xde   :  { %v75_v11 = vpop.f32.mrb[0].mxu0 }
  0xdf   :  { %v82_v13 = vadd.f32 %v75_v11, %v23_v10  ;;  %v119_v14 = vpop.f32.mrb[1].mxu0 }
  0xe0   :  { %v78_v15 = vpop.f32.mrb[2].mxu0 }
  0xe1   :  { %85 = vst.msk [vmem:[#allocation2] sm:$0xff] %vm19_vm1, %v82_v13  ;;  %v83_v16 = vadd.f32 %v78_v15, %v24_v12  ;;  %v120_v17 = vpop.f32.mrb[3].mxu0 }
  0xe3   :  { %87 = vst.msk [vmem:[#allocation2 + $0x8] sm:$0xf] %vm21_vm4, %v83_v16 }
  0xe8   :  { %v91_v19 = vld [vmem:[#allocation2] sm:$0xff] }
  0xe9   :  { %v100_v20 = vadd.f32 %v109_v18, %v91_v19 }
  0xea   :  { %v92_v21 = vld [vmem:[#allocation2 + $0x8] sm:$0xf] }
  0xeb   :  { %102 = vst.msk [vmem:[%s178_s3] sm:$0xff] %vm19_vm1, %v100_v20  ;;  %v101_v22 = vadd.f32 %v109_v18, %v92_v21 }
  0xed   :  { %103 = vst.msk [vmem:[%s178_s3 + $0x8] sm:$0xf] %vm21_vm4, %v101_v22 }

// kernel: predictor_forward.15
= control target key start
LH: loop header
LB: loop body
LE: loop exit
PB: predicated region body
PF: predicated region fallthrough
CT: control target
= control target key end

     0   :  { %vm24_vm0 = vcmask 261120   ;;  %vm31_vm1 = vcmask 259072   ;;  %vm158_vm2 = vcmask 783360   ;;  %vm155_vm3 = vcmask 785408   ;;  %s264_s0 = inlined_call_operand.vmem [shape: f32[22,32], index: 0, kind: input, shape index: {}]   ;;  %s265_s3 = inlined_call_operand.vmem [shape: f32[32,96], index: 3, kind: input, shape index: {}]   ;;  %s266_s1 = inlined_call_operand.vmem [shape: f32[1,32], index: 1, kind: input, shape index: {}]   ;;  %s267_s2 = inlined_call_operand.vmem [shape: f32[1,32], index: 2, kind: input, shape index: {}]   ;;  %s268_s4 = inlined_call_operand.vmem [shape: f32[1,96], index: 4, kind: input, shape index: {}]   ;;  %s269_s5 = inlined_call_operand.vmem [shape: f32[22,96], index: 5, kind: output, shape index: {}]  }
   0x1   :  { %v21_v0 = vld [vmem:[%s264_s0] sm:$0xff]  ;;  %v23_v1 = vld [vmem:[%s264_s0 + $0x10] sm:$0x3f]  ;;  %v22_v2 = vld [vmem:[%s264_s0 + $0x8] sm:$0xff] }
   0x2   :  { %v25_v3 = vsel %vm24_vm0, %v21_v0, 0.0  ;;  %v32_v4 = vsel %vm31_vm1, %v23_v1, 0.0  ;;  %v28_v5 = vsel %vm24_vm0, %v22_v2, 0.0  ;;  %v88_v21 = vld [vmem:[%s265_s3] sm:$0xff]  ;;  %v89_v22 = vld [vmem:[%s265_s3 + $0x8] sm:$0xff]  ;;  %v90_v24 = vld [vmem:[%s265_s3 + $0x10] sm:$0xff] }
   0x3   :  { %26 = vadd.xlane.f32.xlu0 %v25_v3  ;;  %33 = vadd.xlane.f32.xlu1 %v32_v4  ;;  %v92_v23 = vpack.c.bf16 %v89_v22, %v88_v21  ;;  %v91_v25 = vld [vmem:[%s265_s3 + $0x18] sm:$0xff]  ;;  %v164_v38 = vld [vmem:[%s266_s1] ss:$0 sm:$0xff] }
   0x4   :  { %v93_v26 = vpack.c.bf16 %v91_v25, %v90_v24  ;;  %v165_v44 = vld [vmem:[%s267_s2] ss:$0 sm:$0xff] }
   0x5   :  { %173 = vmatprep.subr.bf16.mxu0 %v92_v23  ;;  %v166_v52 = vld [vmem:[%s268_s4] ss:$0 sm:$0xff] }
   0x6   :  { %174 = vmatpush3.bf16.msra.mxu0 %v92_v23 }
   0x7   :  { %29 = vadd.xlane.f32.xlu0 %v28_v5  ;;  %175 = vmatprep.subr.bf16.mxu0 %v93_v26 }
   0xa   :  { %176 = vmatpush3.bf16.msra.mxu0 %v93_v26 }
  0x90   :  { %v27_v6 = vpop.xlane.xlu0 %26  ;;  %v34_v7 = vpop.xlane.xlu1 %33 }
  0x91   :  { %v36_v8 = vmul.f32 0.03125, %v27_v6  ;;  %v38_v9 = vmul.f32 0.03125, %v34_v7 }
  0x93   :  { %v39_v10 = vsub.f32 %v21_v0, %v36_v8  ;;  %v41_v11 = vsub.f32 %v23_v1, %v38_v9 }
  0x94   :  { %v30_v12 = vpop.xlane.xlu0 %29 }
  0x95   :  { %v37_v13 = vmul.f32 0.03125, %v30_v12  ;;  %v42_v14 = vmul.f32 %v39_v10, %v39_v10  ;;  %v44_v15 = vmul.f32 %v41_v11, %v41_v11 }
  0x97   :  { %v40_v16 = vsub.f32 %v22_v2, %v37_v13  ;;  %v45_v17 = vsel %vm24_vm0, %v42_v14, 0.0  ;;  %v51_v18 = vsel %vm31_vm1, %v44_v15, 0.0 }
  0x98   :  { %46 = vadd.xlane.f32.xlu1 %v45_v17 }
  0x99   :  { %v43_v19 = vmul.f32 %v40_v16, %v40_v16 }
  0x9b   :  { %v48_v20 = vsel %vm24_vm0, %v43_v19, 0.0 }
  0x9c   :  { %52 = vadd.xlane.f32.xlu1 %v51_v18  ;;  %49 = vadd.xlane.f32.xlu0 %v48_v20 }
 0x125   :  { %v47_v27 = vpop.xlane.xlu1 %46 }
 0x126   :  { %v54_v28 = vmul.f32 0.03125, %v47_v27 }
 0x128   :  { %v57_v29 = vadd.f32 1e-05, %v54_v28 }
 0x129   :  { %v53_v30 = vpop.xlane.xlu1 %52  ;;  %v50_v31 = vpop.xlane.xlu0 %49 }
 0x12a   :  { %181 = vrsqrt.f32 %v57_v29  ;;  %v56_v32 = vmul.f32 0.03125, %v53_v30  ;;  %v55_v33 = vmul.f32 0.03125, %v50_v31 }
 0x12c   :  { %v59_v34 = vadd.f32 1e-05, %v56_v32  ;;  %v58_v35 = vadd.f32 1e-05, %v55_v33 }
 0x12e   :  { %183 = vrsqrt.f32 %v59_v34 }
 0x12f   :  { %185 = vrsqrt.f32 %v58_v35 }
 0x134   :  { %v182_v36 = vpop.eup %181 }
 0x135   :  { %v63_v37 = vmul.f32 %v182_v36, %v39_v10 }
 0x137   :  { %v73_v43 = vmul.f32 %v164_v38, %v63_v37 }
 0x138   :  { %v184_v39 = vpop.eup %183 }
 0x139   :  { %v186_v40 = vpop.eup %185  ;;  %v65_v41 = vmul.f32 %v184_v39, %v41_v11  ;;  %v83_v48 = vadd.f32 %v165_v44, %v73_v43 }
 0x13a   :  { %v64_v42 = vmul.f32 %v186_v40, %v40_v16 }
 0x13b   :  { %v75_v45 = vmul.f32 %v164_v38, %v65_v41 }
 0x13c   :  { %v74_v46 = vmul.f32 %v164_v38, %v64_v42 }
 0x13d   :  { %v85_v47 = vadd.f32 %v165_v44, %v75_v45 }
 0x13e   :  { %v84_v49 = vadd.f32 %v165_v44, %v74_v46 }
 0x13f   :  { %v87_v50 = vpack.c.bf16 %v85_v47, %v85_v47 }
 0x140   :  { %v86_v51 = vpack.c.bf16 %v84_v49, %v83_v48 }
 0x142   :  { %177 = vmatprep.mubr.msk.bf16.mxu0 %vm24_vm0, %v86_v51 }
 0x143   :  { %178 = vmatmul.mubr.msk.bf16.vlgmr.msra.gmra.mrb[0].mxu0 %vm24_vm0, %v87_v50 }
 0x216   :  { %v179_v53 = vpop.f32.mrb[0].mxu0 }
 0x217   :  { %v150_v54 = vadd.f32 %v179_v53, %v166_v52  ;;  %v141_v55 = vpop.f32.mrb[1].mxu0 }
 0x218   :  { %v142_v56 = vadd.f32 %v166_v52, %v141_v55  ;;  %v180_v57 = vpop.f32.mrb[2].mxu0 }
 0x219   :  { %159 = vst.msk [vmem:[%s269_s5 + $0x10] sm:$0x3f] %vm158_vm2, %v150_v54  ;;  %v144_v58 = vpop.f32.mrb[3].mxu0 }
 0x21a   :  { %156 = vst.msk [vmem:[%s269_s5] sm:$0xff] %vm155_vm3, %v142_v56  ;;  %v145_v59 = vadd.f32 %v166_v52, %v144_v58 }
 0x21c   :  { %157 = vst.msk [vmem:[%s269_s5 + $0x8] sm:$0xff] %vm155_vm3, %v145_v59 }

// kernel: predictor_forward.17
= control target key start
LH: loop header
LB: loop body
LE: loop exit
PB: predicated region body
PF: predicated region fallthrough
CT: control target
= control target key end

     0   :  { %vm22_vm0 = vcmask 261120   ;;  %vm25_vm1 = vcmask 259072   ;;  %v148_v3 = vmov 0.0   ;;  %s227_s1 = inlined_call_operand.vmem [shape: f32[32,32], index: 1, kind: input, shape index: {}]   ;;  %s228_s0 = inlined_call_operand.vmem [shape: f32[22,32], index: 0, kind: input, shape index: {}]   ;;  %s229_s2 = inlined_call_operand.vmem [shape: f32[1,32], index: 2, kind: input, shape index: {}]   ;;  %s230_s3 = inlined_call_operand.vmem [shape: f32[22,32], index: 3, kind: input, shape index: {}]   ;;  %s231_s4 = inlined_call_operand.vmem [shape: f32[22,32], index: 4, kind: output, shape index: {}]  }
   0x1   :  { %v35_v0 = vld [vmem:[%s227_s1] sm:$0xff]  ;;  %v36_v1 = vld [vmem:[%s227_s1 + $0x8] sm:$0xff]  ;;  %v37_v2 = vld [vmem:[%s227_s1 + $0x10] sm:$0xff]  ;;  %26 = vst.msk [vmem:[#allocation2 + $0x10] sm:$0x3f] %vm25_vm1, %v148_v3 }
   0x2   :  { %23 = vst.msk [vmem:[#allocation2] sm:$0xff] %vm22_vm0, %v148_v3  ;;  %24 = vst.msk [vmem:[#allocation2 + $0x8] sm:$0xff] %vm22_vm0, %v148_v3  ;;  %v39_v4 = vpack.c.bf16 %v36_v1, %v35_v0  ;;  %v38_v5 = vld [vmem:[%s227_s1 + $0x18] sm:$0xff]  ;;  %v30_v6 = vld [vmem:[%s228_s0] sm:$0xff] }
   0x3   :  { %v31_v7 = vld [vmem:[%s228_s0 + $0x8] sm:$0xff]  ;;  %v40_v8 = vpack.c.bf16 %v38_v5, %v37_v2  ;;  %v32_v10 = vld [vmem:[%s228_s0 + $0x10] sm:$0x3f]  ;;  %v134_v22 = vld [vmem:[%s229_s2] ss:$0 sm:$0xff] }
   0x4   :  { %v33_v9 = vpack.c.bf16 %v31_v7, %v30_v6  ;;  %139 = vmatprep.subr.bf16.mxu0 %v39_v4  ;;  %v34_v11 = vpack.c.bf16 %v32_v10, %v32_v10  ;;  %v121_v24 = vld [vmem:[%s230_s3 + $0x10] sm:$0x3f]  ;;  %v119_v26 = vld [vmem:[%s230_s3] sm:$0xff]  ;;  %v120_v29 = vld [vmem:[%s230_s3 + $0x8] sm:$0xff] }
   0x5   :  { %140 = vmatpush3.bf16.msra.mxu0 %v39_v4 }
   0x6   :  { %143 = vmatprep.mubr.msk.bf16.mxu0 %vm22_vm0, %v33_v9  ;;  %141 = vmatprep.subr.bf16.mxu0 %v40_v8 }
   0x8   :  { %v29_v12 = vld [vmem:[#allocation2 + $0x10] sm:$0x3f] }
   0x9   :  { %142 = vmatpush3.bf16.msra.mxu0 %v40_v8  ;;  %v27_v13 = vld [vmem:[#allocation2] sm:$0xff]  ;;  %v28_v17 = vld [vmem:[#allocation2 + $0x8] sm:$0xff] }
   0xc   :  { %144 = vmatmul.mubr.msk.bf16.vlgmr.msra.gmra.mrb[0].mxu0 %vm22_vm0, %v34_v11 }
  0xdf   :  { %v145_v14 = vpop.f32.mrb[0].mxu0 }
  0xe0   :  { %v98_v15 = vadd.f32 %v145_v14, %v29_v12  ;;  %v82_v16 = vpop.f32.mrb[1].mxu0 }
  0xe1   :  { %v96_v18 = vadd.f32 %v82_v16, %v27_v13  ;;  %v146_v19 = vpop.f32.mrb[2].mxu0 }
  0xe2   :  { %102 = vst.msk [vmem:[#allocation2 + $0x10] sm:$0x3f] %vm25_vm1, %v98_v15  ;;  %v85_v20 = vpop.f32.mrb[3].mxu0 }
  0xe3   :  { %99 = vst.msk [vmem:[#allocation2] sm:$0xff] %vm22_vm0, %v96_v18  ;;  %v97_v21 = vadd.f32 %v85_v20, %v28_v17 }
  0xe5   :  { %100 = vst.msk [vmem:[#allocation2 + $0x8] sm:$0xff] %vm22_vm0, %v97_v21 }
  0xe9   :  { %v108_v23 = vld [vmem:[#allocation2 + $0x10] sm:$0x3f] }
  0xea   :  { %v118_v25 = vadd.f32 %v134_v22, %v108_v23  ;;  %v106_v27 = vld [vmem:[#allocation2] sm:$0xff] }
  0xeb   :  { %v116_v28 = vadd.f32 %v134_v22, %v106_v27 }
  0xec   :  { %v124_v30 = vadd.f32 %v121_v24, %v118_v25  ;;  %v107_v31 = vld [vmem:[#allocation2 + $0x8] sm:$0xff] }
  0xed   :  { %v122_v32 = vadd.f32 %v119_v26, %v116_v28  ;;  %v117_v33 = vadd.f32 %v134_v22, %v107_v31 }
  0xee   :  { %127 = vst.msk [vmem:[%s231_s4 + $0x10] sm:$0x3f] %vm25_vm1, %v124_v30 }
  0xef   :  { %125 = vst.msk [vmem:[%s231_s4] sm:$0xff] %vm22_vm0, %v122_v32  ;;  %v123_v34 = vadd.f32 %v120_v29, %v117_v33 }
  0xf1   :  { %126 = vst.msk [vmem:[%s231_s4 + $0x8] sm:$0xff] %vm22_vm0, %v123_v34 }

// kernel: predictor_forward.16
= control target key start
LH: loop header
LB: loop body
LE: loop exit
PB: predicated region body
PF: predicated region fallthrough
CT: control target
= control target key end

     0   :  { %s891_s6 = smov 0   ;;  %s991_s0 = inlined_call_operand.vmem [shape: f32[2,11,96], index: 0, kind: input, shape index: {}]   ;;  %s992_s1 = inlined_call_operand.vmem [shape: f32[2,11,32], index: 1, kind: output, shape index: {}]  }
   0x1 LB: > { %s714_s7 = sadd.s32 4294967295, %s862_s6   ;;  %p718_p0 = scmp.ge.s32.totalorder %s862_s6, 1  ;;  %s862_s6 = sphi %s891_s6, %s11_s6  }
   0x2   : > { %p87_p1 = scmp.lt.s32.totalorder %s862_s6, 3 }
   0x4   : > { %p88_p2 = pnand %p718_p0, %p87_p1 }
   0x5   : > { %p107_p3 = scmp.lt.s32.totalorder (!%p88_p2), %s714_s7, 1  ;;  %v864_v0 = vmov (!%p88_p2), 0.0   ;;  %vm865_vm0 = vmmov (!%p88_p2), 0   ;;  %s866_s12 = smov (!%p88_p2), 96   ;;  %vm127_vm1 = vcmask (!%p88_p2), 64512   ;;  %vm175_vm2 = vcmask (!%p88_p2), 89088  }
   0x6   : > { %91 = sbr.rel (%p88_p2) target bundleno = 1561 (0x619), region = 24  ;;  %751 = vmatprep.subr.bf16.mxu0 (!%p88_p2), %v864_v0  ;;  %753 = vmatprep.mubr.msk.bf16.mxu0 (!%p88_p2), %vm865_vm0, %v864_v0  ;;  %vm179_vm3 = vcmask (!%p88_p2), 83968   ;;  %s867_s13 = smov (!%p88_p2), 64   ;;  %vm205_vm4 = vcmask (!%p88_p2), 1044480   ;;  %vm206_vm5 = vcmask (!%p88_p2), 1045504   ;;  %v869_v17 = vmov (!%p88_p2), 65535  }
   0x7   : > { %757 = vmatprep.subr.bf16.mxu1 (!%p88_p2), %v864_v0  ;;  %759 = vmatprep.mubr.msk.bf16.mxu1 (!%p88_p2), %vm865_vm0, %v864_v0  ;;  %s868_s14 = smov (!%p88_p2), 80   ;;  %v207_v18 = vsel (!%p88_p2), %vm205_vm4, 4294967295, %v869_v17  ;;  %s870_s15 = smov (!%p88_p2), 88   ;;  %vm649_vm6 = vcmask (!%p88_p2), 130048   ;;  %vm652_vm7 = vcmask (!%p88_p2), 195584   ;;  %vm655_vm8 = vcmask (!%p88_p2), 261120  }
   0x8   : > { %v925_v22 = vsel (!%p88_p2), %vm206_vm5, %v207_v18, 0  ;;  %s871_s16 = smov (!%p88_p2), 120   ;;  %s872_s17 = smov (!%p88_p2), 112   ;;  %vm657_vm9 = vcmask (!%p88_p2), 256000  }
   0x9   : > { %s873_s18 = smov (!%p88_p2), 72   ;;  %s874_s19 = smov (!%p88_p2), 104  }
   0xa   : > { %s875_s20 = smov (!%p88_p2), 56   ;;  %s876_s21 = smov (!%p88_p2), 40  }
   0xb   : > { %s877_s22 = smov (!%p88_p2), 48   ;;  %s878_s23 = smov (!%p88_p2), 8  }
   0xc   : > { %s879_s24 = smov (!%p88_p2), 16   ;;  %s880_s25 = smov (!%p88_p2), 24  }
   0xd   : > { %s994_s7 = smov (!%p107_p3, %s714_s7), 1 }
   0xe   : > { %s733_s8 = sshll.u32 %s994_s7, 4 }
   0xf   : > { %s111_s11 = scalar_lea.vmem %s991_s0, %s733_s8  ;;  %s116_s28 = scalar_lea.vmem %s992_s1, %s733_s8 }
  0x10   : > { %v118_v1 = vld [vmem:[%s111_s11] sm:$0xff]  ;;  %v119_v2 = vld [vmem:[%s111_s11 + $0x8] sm:$0x7] }
  0x11   : > { %v913_v3 = vpack.c.bf16 %v119_v2, %v118_v1  ;;  %v120_v4 = vmul.f32 0.35355338, %v118_v1  ;;  %v121_v5 = vmul.f32 0.35355338, %v119_v2 }
  0x13   : > { %125 = vrot.lane.b32.xlu0 %v913_v3, %s866_s12  ;;  %v122_v6 = vpack.c.bf16 %v121_v5, %v120_v4 }
  0x85   : > { %v126_v7 = vpop.permute.xlu0 %125 }
  0x86   : > { %v132_v8 = vsel %vm127_vm1, %v126_v7, 0 }
  0x87   : > { %752 = vmatpush3.bf16.xpose.msra.mxu0 %v132_v8 }
  0x88   : > { %769 = vmatprep.subr.bf16.mxu0 %v864_v0 }
  0x8e   : > { %754 = vmatmul.mubr.msk.bf16.vlgmr.msra.gmra.mrb[0].mxu0 %vm127_vm1, %v122_v6 }
  0x8f   : > { %771 = vmatprep.mubr.msk.bf16.mxu0 %vm865_vm0, %v864_v0 }
 0x161   : > { %v168_v9 = vpop.f32.mrb[0].mxu0 }
 0x162   : > { %v755_v10 = vpop.f32.mrb[1].mxu0  ;;  %v176_v11 = vsel %vm175_vm2, %v168_v9, -inf }
 0x163   : > { %177 = vmax.xlane.f32.xlu0 %v176_v11  ;;  %v171_v12 = vpop.f32.mrb[2].mxu0 }
 0x164   : > { %v756_v13 = vpop.f32.mrb[3].mxu0  ;;  %v180_v14 = vsel %vm179_vm3, %v171_v12, -inf }
 0x165   : > { %181 = vmax.xlane.f32.xlu1 %v180_v14 }
 0x176   : > { %200 = vrot.lane.b32.xlu1 %v913_v3, %s867_s13 }
 0x179   : > { %379 = vrot.lane.b32.xlu0 %v913_v3, %s868_s14 }
 0x1f0   : > { %v178_v15 = vpop.xlane.xlu0 %177 }
 0x1f1   : > { %v183_v16 = vsub.f32 %v168_v9, %v178_v15 }
 0x1f2   : > { %v182_v19 = vpop.xlane.xlu1 %181 }
 0x1f3   : > { %v185_v20 = vmul.f32 1.442695, %v183_v16  ;;  %v184_v21 = vsub.f32 %v171_v12, %v182_v19 }
 0x1f4   : > { %v380_v40 = vpop.permute.xlu0 %379 }
 0x1f5   : > { %824 = vpow2.f32 %v185_v20  ;;  %v187_v23 = vmul.f32 1.442695, %v184_v21  ;;  %v385_v42 = vsel %vm127_vm1, %v380_v40, 0 }
 0x1f6   : > { %v201_v24 = vpop.permute.xlu1 %200 }
 0x1f7   : > { %826 = vpow2.f32 %v187_v23  ;;  %v210_v25 = vand.u32 %v925_v22, %v201_v24 }
 0x1f9   : > { %758 = vmatpush3.bf16.msra.mxu1 %v210_v25 }
 0x1fa   : > { %763 = vmatprep.subr.bf16.mxu1 %v864_v0 }
 0x1ff   : > { %v825_v26 = vpop.eup %824 }
 0x200   : > { %v189_v27 = vsel %vm175_vm2, %v825_v26, 0.0 }
 0x201   : > { %v827_v28 = vpop.eup %826  ;;  %190 = vadd.xlane.f32.xlu1 %v189_v27 }
 0x202   : > { %v192_v29 = vsel %vm179_vm3, %v827_v28, 0.0 }
 0x205   : > { %193 = vadd.xlane.f32.xlu1 %v192_v29 }
 0x216   : > { %256 = vrot.lane.b32.xlu1 %v913_v3, %s870_s15 }
 0x21a   : > { %254 = vrot.lane.b32.xlu1 %v122_v6, %s871_s16 }
 0x21e   : > { %377 = vrot.lane.b32.xlu1 %v122_v6, %s872_s17 }
 0x222   : > { %502 = vrot.lane.b32.xlu1 %v913_v3, %s873_s18 }
 0x226   : > { %500 = vrot.lane.b32.xlu1 %v122_v6, %s874_s19 }
 0x28e   : > { %v191_v30 = vpop.xlane.xlu1 %190 }
 0x28f   : > { %828 = vrcp.f32 %v191_v30 }
 0x292   : > { %v194_v31 = vpop.xlane.xlu1 %193 }
 0x293   : > { %830 = vrcp.f32 %v194_v31 }
 0x296   : > { %v257_v34 = vpop.permute.xlu1 %256 }
 0x297   : > { %v262_v37 = vsel %vm127_vm1, %v257_v34, 0 }
 0x299   : > { %v829_v32 = vpop.eup %828 }
 0x29a   : > { %v197_v35 = vmul.f32 %v829_v32, %v825_v26  ;;  %v255_v39 = vpop.permute.xlu1 %254 }
 0x29d   : > { %v831_v33 = vpop.eup %830 }
 0x29e   : > { %v198_v36 = vmul.f32 %v831_v33, %v827_v28  ;;  %v378_v41 = vpop.permute.xlu1 %377 }
 0x2a0   : > { %v199_v38 = vpack.c.bf16 %v198_v36, %v197_v35 }
 0x2a2   : > { %760 = vmatmul.mubr.msk.bf16.vlgmr.msra.gmra.mrb[0].mxu1 %vm175_vm2, %v199_v38  ;;  %v503_v43 = vpop.permute.xlu1 %502 }
 0x2a3   : > { %764 = vmatpush3.bf16.xpose.msra.mxu1 %v262_v37  ;;  %765 = vmatprep.mubr.msk.bf16.mxu1 %vm865_vm0, %v864_v0  ;;  %v508_v44 = vsel %vm127_vm1, %v503_v43, 0 }
 0x2a4   : > { %775 = vmatprep.subr.bf16.mxu1 %v864_v0 }
 0x2a6   : > { %v501_v45 = vpop.permute.xlu1 %500 }
 0x2aa   : > { %766 = vmatmul.mubr.msk.bf16.vlgmr.msra.gmra.mrb[4].mxu1 %vm127_vm1, %v255_v39 }
 0x2ab   : > { %776 = vmatpush3.bf16.xpose.msra.mxu1 %v385_v42  ;;  %777 = vmatprep.mubr.msk.bf16.mxu1 %vm865_vm0, %v864_v0 }
 0x2ac   : > { %787 = vmatprep.subr.bf16.mxu1 %v864_v0 }
 0x2b2   : > { %778 = vmatmul.mubr.msk.bf16.vlgmr.msra.gmra.mrb[8].mxu1 %vm127_vm1, %v378_v41 }
 0x2b3   : > { %788 = vmatpush3.bf16.xpose.msra.mxu1 %v508_v44  ;;  %789 = vmatprep.mubr.msk.bf16.mxu1 %vm865_vm0, %v864_v0 }
 0x2ba   : > { %790 = vmatmul.mubr.msk.bf16.vlgmr.msra.gmra.mrb[12].mxu1 %vm127_vm1, %v501_v45 }
 0x375   : > { %v948_v46 = vpop.f32.mrb[0].mxu1 }
 0x376   : > { %v761_v47 = vpop.f32.mrb[1].mxu1 }
 0x377   : > { %v950_v48 = vpop.f32.mrb[2].mxu1 }
 0x378   : > { %v762_v49 = vpop.f32.mrb[3].mxu1 }
 0x37d   : > { %v298_v50 = vpop.f32.mrb[4].mxu1 }
 0x37e   : > { %v767_v51 = vpop.f32.mrb[5].mxu1  ;;  %v305_v52 = vsel %vm175_vm2, %v298_v50, -inf }
 0x37f   : > { %306 = vmax.xlane.f32.xlu1 %v305_v52  ;;  %v301_v53 = vpop.f32.mrb[6].mxu1 }
 0x380   : > { %v768_v54 = vpop.f32.mrb[7].mxu1  ;;  %v308_v55 = vsel %vm179_vm3, %v301_v53, -inf }
 0x381   : > { %309 = vmax.xlane.f32.xlu0 %v308_v55 }
 0x385   : > { %v421_v56 = vpop.f32.mrb[8].mxu1 }
 0x386   : > { %v779_v57 = vpop.f32.mrb[9].mxu1  ;;  %v428_v58 = vsel %vm175_vm2, %v421_v56, -inf }
 0x387   : > { %429 = vmax.xlane.f32.xlu1 %v428_v58  ;;  %v424_v59 = vpop.f32.mrb[10].mxu1 }
 0x388   : > { %v780_v60 = vpop.f32.mrb[11].mxu1  ;;  %v431_v61 = vsel %vm179_vm3, %v424_v59, -inf }
 0x389   : > { %432 = vmax.xlane.f32.xlu0 %v431_v61 }
 0x38d   : > { %v544_v62 = vpop.f32.mrb[12].mxu1 }
 0x38e   : > { %v791_v63 = vpop.f32.mrb[13].mxu1  ;;  %v551_v1 = vsel %vm175_vm2, %v544_v62, -inf }
 0x38f   : > { %552 = vmax.xlane.f32.xlu1 %v551_v1  ;;  %v547_v2 = vpop.f32.mrb[14].mxu1 }
 0x390   : > { %v792_v4 = vpop.f32.mrb[15].mxu1  ;;  %v554_v5 = vsel %vm179_vm3, %v547_v2, -inf }
 0x391   : > { %555 = vmax.xlane.f32.xlu0 %v554_v5 }
 0x3a0   : > { %328 = vrot.lane.b32.xlu1 %v913_v3, %s875_s20 }
 0x40c   : > { %v307_v6 = vpop.xlane.xlu1 %306 }
 0x40d   : > { %v311_v7 = vsub.f32 %v298_v50, %v307_v6 }
 0x40e   : > { %v310_v8 = vpop.xlane.xlu0 %309 }
 0x40f   : > { %v313_v9 = vmul.f32 1.442695, %v311_v7  ;;  %v312_v10 = vsub.f32 %v301_v53, %v310_v8 }
 0x411   : > { %832 = vpow2.f32 %v313_v9  ;;  %v315_v11 = vmul.f32 1.442695, %v312_v10 }
 0x413   : > { %834 = vpow2.f32 %v315_v11 }
 0x414   : > { %v430_v12 = vpop.xlane.xlu1 %429 }
 0x415   : > { %v434_v13 = vsub.f32 %v421_v56, %v430_v12 }
 0x416   : > { %v433_v14 = vpop.xlane.xlu0 %432 }
 0x417   : > { %v436_v15 = vmul.f32 1.442695, %v434_v13  ;;  %v435_v16 = vsub.f32 %v424_v59, %v433_v14 }
 0x419   : > { %836 = vpow2.f32 %v436_v15  ;;  %v438_v17 = vmul.f32 1.442695, %v435_v16 }
 0x41b   : > { %v833_v18 = vpop.eup %832  ;;  %838 = vpow2.f32 %v438_v17 }
 0x41c   : > { %v553_v19 = vpop.xlane.xlu1 %552  ;;  %v317_v20 = vsel %vm175_vm2, %v833_v18, 0.0 }
 0x41d   : > { %v835_v21 = vpop.eup %834  ;;  %v557_v23 = vsub.f32 %v544_v62, %v553_v19  ;;  %318 = vadd.xlane.f32.xlu1 %v317_v20 }
 0x41e   : > { %v556_v24 = vpop.xlane.xlu0 %555  ;;  %v320_v25 = vsel %vm179_vm3, %v835_v21, 0.0 }
 0x41f   : > { %v559_v26 = vmul.f32 1.442695, %v557_v23  ;;  %v558_v27 = vsub.f32 %v547_v2, %v556_v24  ;;  %321 = vadd.xlane.f32.xlu0 %v320_v25 }
 0x420   : > { %v329_v28 = vpop.permute.xlu1 %328 }
 0x421   : > { %840 = vpow2.f32 %v559_v26  ;;  %v561_v29 = vmul.f32 1.442695, %v558_v27  ;;  %v334_v30 = vand.u32 %v329_v28, %v925_v22 }
 0x423   : > { %v837_v31 = vpop.eup %836  ;;  %842 = vpow2.f32 %v561_v29  ;;  %770 = vmatpush3.bf16.msra.mxu0 %v334_v30 }
 0x424   : > { %v440_v32 = vsel %vm175_vm2, %v837_v31, 0.0  ;;  %781 = vmatprep.subr.bf16.mxu0 %v864_v0 }
 0x425   : > { %v839_v33 = vpop.eup %838  ;;  %441 = vadd.xlane.f32.xlu1 %v440_v32 }
 0x426   : > { %v443_v34 = vsel %vm179_vm3, %v839_v33, 0.0 }
 0x427   : > { %444 = vadd.xlane.f32.xlu0 %v443_v34 }
 0x42b   : > { %v841_v35 = vpop.eup %840 }
 0x42c   : > { %v563_v36 = vsel %vm175_vm2, %v841_v35, 0.0 }
 0x42d   : > { %v843_v37 = vpop.eup %842  ;;  %564 = vadd.xlane.f32.xlu1 %v563_v36 }
 0x42e   : > { %v566_v38 = vsel %vm179_vm3, %v843_v37, 0.0 }
 0x42f   : > { %567 = vadd.xlane.f32.xlu0 %v566_v38 }
 0x43e   : > { %574 = vrot.lane.b32.xlu1 %v913_v3, %s876_s21 }
 0x445   : > { %451 = vrot.lane.b32.xlu0 %v913_v3, %s877_s22 }
 0x4aa   : > { %v319_v39 = vpop.xlane.xlu1 %318 }
 0x4ab   : > { %844 = vrcp.f32 %v319_v39 }
 0x4ac   : > { %v322_v40 = vpop.xlane.xlu0 %321 }
 0x4ad   : > { %846 = vrcp.f32 %v322_v40 }
 0x4b2   : > { %v442_v41 = vpop.xlane.xlu1 %441 }
 0x4b3   : > { %848 = vrcp.f32 %v442_v41 }
 0x4b4   : > { %v445_v42 = vpop.xlane.xlu0 %444 }
 0x4b5   : > { %v845_v43 = vpop.eup %844  ;;  %850 = vrcp.f32 %v445_v42 }
 0x4b6   : > { %v325_v45 = vmul.f32 %v845_v43, %v833_v18 }
 0x4b7   : > { %v847_v44 = vpop.eup %846 }
 0x4b8   : > { %v326_v47 = vmul.f32 %v847_v44, %v835_v21 }
 0x4ba   : > { %v565_v49 = vpop.xlane.xlu1 %564  ;;  %v327_v50 = vpack.c.bf16 %v326_v47, %v325_v45 }
 0x4bb   : > { %852 = vrcp.f32 %v565_v49 }
 0x4bc   : > { %v568_v51 = vpop.xlane.xlu0 %567  ;;  %772 = vmatmul.mubr.msk.bf16.vlgmr.msra.gmra.mrb[4].mxu0 %vm175_vm2, %v327_v50 }
 0x4bd   : > { %854 = vrcp.f32 %v568_v51  ;;  %783 = vmatprep.mubr.msk.bf16.mxu0 %vm865_vm0, %v864_v0  ;;  %v849_v3 = vpop.eup %848 }
 0x4be   : > { %v575_v55 = vpop.permute.xlu1 %574  ;;  %v448_v57 = vmul.f32 %v849_v3, %v837_v31 }
 0x4bf   : > { %v851_v52 = vpop.eup %850  ;;  %v580_v58 = vand.u32 %v575_v55, %v925_v22 }
 0x4c0   : > { %v449_v53 = vmul.f32 %v851_v52, %v839_v33  ;;  %v452_v54 = vpop.permute.xlu0 %451 }
 0x4c1   : > { %v457_v56 = vand.u32 %v452_v54, %v925_v22 }
 0x4c2   : > { %v450_v59 = vpack.c.bf16 %v449_v53, %v448_v57 }
 0x4c3   : > { %782 = vmatpush3.bf16.msra.mxu0 %v457_v56 }
 0x4c4   : > { %793 = vmatprep.subr.bf16.mxu0 %v864_v0 }
 0x4c5   : > { %v853_v60 = vpop.eup %852 }
 0x4c6   : > { %784 = vmatmul.mubr.msk.bf16.vlgmr.msra.gmra.mrb[8].mxu0 %vm175_vm2, %v450_v59  ;;  %v571_v63 = vmul.f32 %v853_v60, %v841_v35 }
 0x4c7   : > { %v855_v61 = vpop.eup %854  ;;  %794 = vmatpush3.bf16.msra.mxu0 %v580_v58  ;;  %795 = vmatprep.mubr.msk.bf16.mxu0 %vm865_vm0, %v864_v0 }
 0x4c8   : > { %v572_v62 = vmul.f32 %v855_v61, %v843_v37 }
 0x4ca   : > { %v573_v1 = vpack.c.bf16 %v572_v62, %v571_v63 }
 0x4ce   : > { %796 = vmatmul.mubr.msk.bf16.vlgmr.msra.gmra.mrb[12].mxu0 %vm175_vm2, %v573_v1 }
 0x58f   : > { %v370_v2 = vpop.f32.mrb[4].mxu0 }
 0x590   : > { %625 = vrot.lane.b32.xlu1 %v370_v2, %s878_s23  ;;  %v773_v22 = vpop.f32.mrb[5].mxu0 }
 0x591   : > { %v373_v4 = vpop.f32.mrb[6].mxu0 }
 0x592   : > { %627 = vrot.lane.b32.xlu0 %v373_v4, %s878_s23  ;;  %v774_v5 = vpop.f32.mrb[7].mxu0 }
 0x599   : > { %v493_v6 = vpop.f32.mrb[8].mxu0 }
 0x59a   : > { %633 = vrot.lane.b32.xlu1 %v493_v6, %s879_s24  ;;  %v785_v7 = vpop.f32.mrb[9].mxu0 }
 0x59b   : > { %v496_v8 = vpop.f32.mrb[10].mxu0 }
 0x59c   : > { %635 = vrot.lane.b32.xlu0 %v496_v8, %s879_s24  ;;  %v786_v0 = vpop.f32.mrb[11].mxu0 }
 0x5a1   : > { %v616_v9 = vpop.f32.mrb[12].mxu0 }
 0x5a2   : > { %641 = vrot.lane.b32.xlu1 %v616_v9, %s880_s25  ;;  %v797_v10 = vpop.f32.mrb[13].mxu0 }
 0x5a3   : > { %v619_v11 = vpop.f32.mrb[14].mxu0 }
 0x5a4   : > { %643 = vrot.lane.b32.xlu0 %v619_v11, %s880_s25  ;;  %v798_v12 = vpop.f32.mrb[15].mxu0 }
 0x602   : > { %v626_v13 = vpop.permute.xlu1 %625 }
 0x603   : > { %v647_v17 = vsel %vm127_vm1, %v948_v46, %v626_v13 }
 0x604   : > { %v628_v14 = vpop.permute.xlu0 %627 }
 0x605   : > { %v648_v20 = vsel %vm127_vm1, %v950_v48, %v628_v14 }
 0x60c   : > { %v634_v15 = vpop.permute.xlu1 %633 }
 0x60d   : > { %v650_v18 = vsel %vm649_vm6, %v647_v17, %v634_v15 }
 0x60e   : > { %v636_v16 = vpop.permute.xlu0 %635 }
 0x60f   : > { %v651_v23 = vsel %vm649_vm6, %v648_v20, %v636_v16 }
 0x614   : > { %v642_v19 = vpop.permute.xlu1 %641 }
 0x615   : > { %v653_v21 = vsel %vm652_vm7, %v650_v18, %v642_v19 }
 0x616   : > { %656 = vst.msk [vmem:[%s116_s28] sm:$0xff] %vm655_vm8, %v653_v21  ;;  %v644_v24 = vpop.permute.xlu0 %643 }
 0x617   : > { %v654_v25 = vsel %vm652_vm7, %v651_v23, %v644_v24 }
 0x618   : > { %658 = vst.msk [vmem:[%s116_s28 + $0x8] sm:$0x7] %vm657_vm9, %v654_v25 }
 0x619 PF: > { %s11_s6 = sadd.s32 1, %s862_s6  }
 0x61a   : > { %p8_p4 = scmp.ge.s32.totalorder %s11_s6, 4  }
 0x61c   :  { %10 = sbr.rel (!%p8_p4) target bundleno = 1 (0x1), region = 54 }

// kernel: predictor_forward.19
= control target key start
LH: loop header
LB: loop body
LE: loop exit
PB: predicated region body
PF: predicated region fallthrough
CT: control target
= control target key end

     0   :  { %vm25_vm0 = vcmask 259072   ;;  %v176_v3 = vmov 0.0   ;;  %vm22_vm1 = vcmask 261120   ;;  %s289_s1 = inlined_call_operand.vmem [shape: f32[128,32], index: 1, kind: input, shape index: {}]   ;;  %s290_s0 = inlined_call_operand.vmem [shape: f32[22,128], index: 0, kind: input, shape index: {}]   ;;  %s291_s2 = inlined_call_operand.vmem [shape: f32[1,32], index: 2, kind: input, shape index: {}]   ;;  %s292_s3 = inlined_call_operand.vmem [shape: f32[22,32], index: 3, kind: input, shape index: {}]   ;;  %s293_s4 = inlined_call_operand.vmem [shape: f32[22,32], index: 4, kind: output, shape index: {}]  }
   0x1   :  { %v35_v0 = vld [vmem:[%s289_s1] sm:$0xff]  ;;  %v36_v1 = vld [vmem:[%s289_s1 + $0x8] sm:$0xff]  ;;  %v37_v2 = vld [vmem:[%s289_s1 + $0x10] sm:$0xff]  ;;  %26 = vst.msk [vmem:[#allocation2 + $0x10] sm:$0x3f] %vm25_vm0, %v176_v3 }
   0x2   :  { %v51_v4 = vpack.c.bf16 %v36_v1, %v35_v0  ;;  %v38_v5 = vld [vmem:[%s289_s1 + $0x18] sm:$0xff]  ;;  %v39_v7 = vld [vmem:[%s289_s1 + $0x20] sm:$0xff]  ;;  %v40_v8 = vld [vmem:[%s289_s1 + $0x28] sm:$0xff]  ;;  %23 = vst.msk [vmem:[#allocation2] sm:$0xff] %vm22_vm1, %v176_v3 }
   0x3   :  { %v52_v6 = vpack.c.bf16 %v38_v5, %v37_v2  ;;  %v53_v9 = vpack.c.bf16 %v40_v8, %v39_v7  ;;  %v30_v10 = vld [vmem:[%s290_s0] sm:$0xff]  ;;  %v31_v11 = vld [vmem:[%s290_s0 + $0x8] sm:$0xff]  ;;  %v41_v12 = vld [vmem:[%s289_s1 + $0x30] sm:$0xff]  ;;  %24 = vst.msk [vmem:[#allocation2 + $0x8] sm:$0xff] %vm22_vm1, %v176_v3 }
   0x4   :  { %155 = vmatprep.subr.bf16.mxu0 %v51_v4  ;;  %v42_v13 = vld [vmem:[%s289_s1 + $0x38] sm:$0xff]  ;;  %v33_v14 = vpack.c.bf16 %v31_v11, %v30_v10  ;;  %v43_v16 = vld [vmem:[%s289_s1 + $0x40] sm:$0xff]  ;;  %v44_v17 = vld [vmem:[%s289_s1 + $0x48] sm:$0xff] }
   0x5   :  { %156 = vmatpush3.bf16.msra.mxu0 %v51_v4  ;;  %v54_v15 = vpack.c.bf16 %v42_v13, %v41_v12  ;;  %v55_v18 = vpack.c.bf16 %v44_v17, %v43_v16  ;;  %v45_v19 = vld [vmem:[%s289_s1 + $0x50] sm:$0xff]  ;;  %v46_v20 = vld [vmem:[%s289_s1 + $0x58] sm:$0xff]  ;;  %v47_v22 = vld [vmem:[%s289_s1 + $0x60] sm:$0xff] }
   0x6   :  { %157 = vmatprep.subr.bf16.mxu0 %v52_v6  ;;  %171 = vmatprep.mubr.bf16.mxu0 %v33_v14  ;;  %v56_v21 = vpack.c.bf16 %v46_v20, %v45_v19  ;;  %v48_v23 = vld [vmem:[%s289_s1 + $0x68] sm:$0xff]  ;;  %v49_v25 = vld [vmem:[%s289_s1 + $0x70] sm:$0xff]  ;;  %v50_v26 = vld [vmem:[%s289_s1 + $0x78] sm:$0xff] }
   0x7   :  { %v57_v24 = vpack.c.bf16 %v48_v23, %v47_v22  ;;  %v58_v27 = vpack.c.bf16 %v50_v26, %v49_v25  ;;  %v32_v28 = vld [vmem:[%s290_s0 + $0x10] sm:$0x3f]  ;;  %v144_v40 = vld [vmem:[%s291_s2] ss:$0 sm:$0xff]  ;;  %v132_v47 = vld [vmem:[%s292_s3 + $0x8] sm:$0xff] }
   0x8   :  { %v34_v29 = vpack.c.bf16 %v32_v28, %v32_v28  ;;  %v29_v30 = vld [vmem:[#allocation2 + $0x10] sm:$0x3f]  ;;  %v131_v44 = vld [vmem:[%s292_s3] sm:$0xff] }
   0x9   :  { %158 = vmatpush3.bf16.msra.mxu0 %v52_v6  ;;  %v27_v31 = vld [vmem:[#allocation2] sm:$0xff]  ;;  %v133_v42 = vld [vmem:[%s292_s3 + $0x10] sm:$0x3f] }
   0xa   :  { %159 = vmatprep.subr.bf16.mxu0 %v53_v9  ;;  %v28_v35 = vld [vmem:[#allocation2 + $0x8] sm:$0xff] }
   0xd   :  { %160 = vmatpush3.bf16.msra.mxu0 %v53_v9 }
   0xe   :  { %161 = vmatprep.subr.bf16.mxu0 %v54_v15 }
  0x11   :  { %162 = vmatpush3.bf16.msra.mxu0 %v54_v15 }
  0x12   :  { %163 = vmatprep.subr.bf16.mxu0 %v55_v18 }
  0x15   :  { %164 = vmatpush3.bf16.msra.mxu0 %v55_v18 }
  0x16   :  { %165 = vmatprep.subr.bf16.mxu0 %v56_v21 }
  0x19   :  { %166 = vmatpush3.bf16.msra.mxu0 %v56_v21 }
  0x1a   :  { %167 = vmatprep.subr.bf16.mxu0 %v57_v24 }
  0x1d   :  { %168 = vmatpush3.bf16.msra.mxu0 %v57_v24 }
  0x1e   :  { %169 = vmatprep.subr.bf16.mxu0 %v58_v27 }
  0x21   :  { %170 = vmatpush3.bf16.msra.mxu0 %v58_v27 }
  0x24   :  { %172 = vmatmul.mubr.bf16.vlgmr.msra.gmra.mrb[0].mxu0 %v34_v29 }
  0xf7   :  { %v173_v32 = vpop.f32.mrb[0].mxu0 }
  0xf8   :  { %v109_v33 = vadd.f32 %v173_v32, %v29_v30  ;;  %v93_v34 = vpop.f32.mrb[1].mxu0 }
  0xf9   :  { %v107_v36 = vadd.f32 %v93_v34, %v27_v31  ;;  %v174_v37 = vpop.f32.mrb[2].mxu0 }
  0xfa   :  { %114 = vst.msk [vmem:[#allocation2 + $0x10] sm:$0x3f] %vm25_vm0, %v109_v33  ;;  %v96_v38 = vpop.f32.mrb[3].mxu0 }
  0xfb   :  { %111 = vst.msk [vmem:[#allocation2] sm:$0xff] %vm22_vm1, %v107_v36  ;;  %v108_v39 = vadd.f32 %v96_v38, %v28_v35 }
  0xfd   :  { %112 = vst.msk [vmem:[#allocation2 + $0x8] sm:$0xff] %vm22_vm1, %v108_v39 }
 0x101   :  { %v120_v41 = vld [vmem:[#allocation2 + $0x10] sm:$0x3f] }
 0x102   :  { %v130_v43 = vadd.f32 %v144_v40, %v120_v41  ;;  %v118_v45 = vld [vmem:[#allocation2] sm:$0xff] }
 0x103   :  { %v128_v46 = vadd.f32 %v144_v40, %v118_v45 }
 0x104   :  { %v136_v48 = vadd.f32 %v133_v42, %v130_v43  ;;  %v119_v49 = vld [vmem:[#allocation2 + $0x8] sm:$0xff] }
 0x105   :  { %v134_v50 = vadd.f32 %v131_v44, %v128_v46  ;;  %v129_v51 = vadd.f32 %v144_v40, %v119_v49 }
 0x106   :  { %139 = vst.msk [vmem:[%s293_s4 + $0x10] sm:$0x3f] %vm25_vm0, %v136_v48 }
 0x107   :  { %137 = vst.msk [vmem:[%s293_s4] sm:$0xff] %vm22_vm1, %v134_v50  ;;  %v135_v52 = vadd.f32 %v132_v47, %v129_v51 }
 0x109   :  { %138 = vst.msk [vmem:[%s293_s4 + $0x8] sm:$0xff] %vm22_vm1, %v135_v52 }

// kernel: predictor_forward.18
= control target key start
LH: loop header
LB: loop body
LE: loop exit
PB: predicated region body
PF: predicated region fallthrough
CT: control target
= control target key end

     0   :  { %vm24_vm0 = vcmask 261120   ;;  %vm31_vm1 = vcmask 259072   ;;  %s295_s0 = inlined_call_operand.vmem [shape: f32[22,32], index: 0, kind: input, shape index: {}]   ;;  %s296_s3 = inlined_call_operand.vmem [shape: f32[32,128], index: 3, kind: input, shape index: {}]   ;;  %s297_s1 = inlined_call_operand.vmem [shape: f32[1,32], index: 1, kind: input, shape index: {}]   ;;  %s298_s2 = inlined_call_operand.vmem [shape: f32[1,32], index: 2, kind: input, shape index: {}]   ;;  %s299_s4 = inlined_call_operand.vmem [shape: f32[1,128], index: 4, kind: input, shape index: {}]   ;;  %s300_s5 = inlined_call_operand.vmem [shape: f32[22,128], index: 5, kind: output, shape index: {}]  }
   0x1   :  { %v21_v0 = vld [vmem:[%s295_s0] sm:$0xff]  ;;  %v23_v1 = vld [vmem:[%s295_s0 + $0x10] sm:$0x3f]  ;;  %v22_v2 = vld [vmem:[%s295_s0 + $0x8] sm:$0xff] }
   0x2   :  { %v25_v3 = vsel %vm24_vm0, %v21_v0, 0.0  ;;  %v32_v4 = vsel %vm31_vm1, %v23_v1, 0.0  ;;  %v28_v5 = vsel %vm24_vm0, %v22_v2, 0.0  ;;  %v88_v21 = vld [vmem:[%s296_s3] sm:$0xff]  ;;  %v89_v22 = vld [vmem:[%s296_s3 + $0x8] sm:$0xff]  ;;  %v90_v24 = vld [vmem:[%s296_s3 + $0x10] sm:$0xff] }
   0x3   :  { %26 = vadd.xlane.f32.xlu0 %v25_v3  ;;  %33 = vadd.xlane.f32.xlu1 %v32_v4  ;;  %v92_v23 = vpack.c.bf16 %v89_v22, %v88_v21  ;;  %v91_v25 = vld [vmem:[%s296_s3 + $0x18] sm:$0xff]  ;;  %v189_v38 = vld [vmem:[%s297_s1] ss:$0 sm:$0xff] }
   0x4   :  { %v93_v26 = vpack.c.bf16 %v91_v25, %v90_v24  ;;  %v190_v44 = vld [vmem:[%s298_s2] ss:$0 sm:$0xff] }
   0x5   :  { %198 = vmatprep.subr.bf16.mxu0 %v92_v23  ;;  %v191_v52 = vld [vmem:[%s299_s4] ss:$0 sm:$0xff] }
   0x6   :  { %199 = vmatpush3.bf16.msra.mxu0 %v92_v23 }
   0x7   :  { %29 = vadd.xlane.f32.xlu0 %v28_v5  ;;  %200 = vmatprep.subr.bf16.mxu0 %v93_v26 }
   0xa   :  { %201 = vmatpush3.bf16.msra.mxu0 %v93_v26 }
  0x90   :  { %v27_v6 = vpop.xlane.xlu0 %26  ;;  %v34_v7 = vpop.xlane.xlu1 %33 }
  0x91   :  { %v36_v8 = vmul.f32 0.03125, %v27_v6  ;;  %v38_v9 = vmul.f32 0.03125, %v34_v7 }
  0x93   :  { %v39_v10 = vsub.f32 %v21_v0, %v36_v8  ;;  %v41_v11 = vsub.f32 %v23_v1, %v38_v9 }
  0x94   :  { %v30_v12 = vpop.xlane.xlu0 %29 }
  0x95   :  { %v37_v13 = vmul.f32 0.03125, %v30_v12  ;;  %v42_v14 = vmul.f32 %v39_v10, %v39_v10  ;;  %v44_v15 = vmul.f32 %v41_v11, %v41_v11 }
  0x97   :  { %v40_v16 = vsub.f32 %v22_v2, %v37_v13  ;;  %v45_v17 = vsel %vm24_vm0, %v42_v14, 0.0  ;;  %v51_v18 = vsel %vm31_vm1, %v44_v15, 0.0 }
  0x98   :  { %46 = vadd.xlane.f32.xlu1 %v45_v17 }
  0x99   :  { %v43_v19 = vmul.f32 %v40_v16, %v40_v16 }
  0x9b   :  { %v48_v20 = vsel %vm24_vm0, %v43_v19, 0.0 }
  0x9c   :  { %52 = vadd.xlane.f32.xlu1 %v51_v18  ;;  %49 = vadd.xlane.f32.xlu0 %v48_v20 }
 0x125   :  { %v47_v27 = vpop.xlane.xlu1 %46 }
 0x126   :  { %v54_v28 = vmul.f32 0.03125, %v47_v27 }
 0x128   :  { %v57_v29 = vadd.f32 1e-05, %v54_v28 }
 0x129   :  { %v53_v30 = vpop.xlane.xlu1 %52  ;;  %v50_v31 = vpop.xlane.xlu0 %49 }
 0x12a   :  { %206 = vrsqrt.f32 %v57_v29  ;;  %v56_v32 = vmul.f32 0.03125, %v53_v30  ;;  %v55_v33 = vmul.f32 0.03125, %v50_v31 }
 0x12c   :  { %v59_v34 = vadd.f32 1e-05, %v56_v32  ;;  %v58_v35 = vadd.f32 1e-05, %v55_v33 }
 0x12e   :  { %208 = vrsqrt.f32 %v59_v34 }
 0x12f   :  { %210 = vrsqrt.f32 %v58_v35 }
 0x134   :  { %v207_v36 = vpop.eup %206 }
 0x135   :  { %v63_v37 = vmul.f32 %v207_v36, %v39_v10 }
 0x137   :  { %v73_v43 = vmul.f32 %v189_v38, %v63_v37 }
 0x138   :  { %v209_v39 = vpop.eup %208 }
 0x139   :  { %v211_v40 = vpop.eup %210  ;;  %v65_v41 = vmul.f32 %v209_v39, %v41_v11  ;;  %v83_v48 = vadd.f32 %v190_v44, %v73_v43 }
 0x13a   :  { %v64_v42 = vmul.f32 %v211_v40, %v40_v16 }
 0x13b   :  { %v75_v45 = vmul.f32 %v189_v38, %v65_v41 }
 0x13c   :  { %v74_v46 = vmul.f32 %v189_v38, %v64_v42 }
 0x13d   :  { %v85_v47 = vadd.f32 %v190_v44, %v75_v45 }
 0x13e   :  { %v84_v49 = vadd.f32 %v190_v44, %v74_v46 }
 0x13f   :  { %v87_v50 = vpack.c.bf16 %v85_v47, %v85_v47 }
 0x140   :  { %v86_v51 = vpack.c.bf16 %v84_v49, %v83_v48 }
 0x142   :  { %202 = vmatprep.mubr.msk.bf16.mxu0 %vm24_vm0, %v86_v51 }
 0x143   :  { %203 = vmatmul.mubr.msk.bf16.vlgmr.msra.gmra.mrb[0].mxu0 %vm24_vm0, %v87_v50 }
 0x216   :  { %v204_v53 = vpop.f32.mrb[0].mxu0 }
 0x217   :  { %v150_v54 = vadd.f32 %v204_v53, %v191_v52  ;;  %v141_v55 = vpop.f32.mrb[1].mxu0 }
 0x218   :  { %v142_v56 = vadd.f32 %v191_v52, %v141_v55  ;;  %v205_v57 = vpop.f32.mrb[2].mxu0 }
 0x219   :  { %v157_v58 = vmul.f32 %v150_v54, %v150_v54  ;;  %v144_v59 = vpop.f32.mrb[3].mxu0 }
 0x21a   :  { %v155_v60 = vmul.f32 %v142_v56, %v142_v56  ;;  %v145_v61 = vadd.f32 %v191_v52, %v144_v59 }
 0x21b   :  { %v160_v62 = vmul.f32 %v157_v58, %v150_v54 }
 0x21c   :  { %v158_v63 = vmul.f32 %v155_v60, %v142_v56  ;;  %v156_v0 = vmul.f32 %v145_v61, %v145_v61 }
 0x21d   :  { %v163_v1 = vmul.f32 0.044715, %v160_v62 }
 0x21e   :  { %v161_v2 = vmul.f32 0.044715, %v158_v63  ;;  %v159_v3 = vmul.f32 %v156_v0, %v145_v61 }
 0x21f   :  { %v166_v4 = vadd.f32 %v163_v1, %v150_v54 }
 0x220   :  { %v164_v5 = vadd.f32 %v161_v2, %v142_v56  ;;  %v162_v6 = vmul.f32 0.044715, %v159_v3 }
 0x221   :  { %v169_v7 = vmul.f32 0.7978846, %v166_v4 }
 0x222   :  { %v167_v8 = vmul.f32 0.7978846, %v164_v5  ;;  %v165_v9 = vadd.f32 %v162_v6, %v145_v61 }
 0x223   :  { %212 = vtanh.f32 %v169_v7 }
 0x224   :  { %214 = vtanh.f32 %v167_v8  ;;  %v168_v10 = vmul.f32 0.7978846, %v165_v9 }
 0x226   :  { %216 = vtanh.f32 %v168_v10 }
 0x22d   :  { %v213_v11 = vpop.eup %212 }
 0x22e   :  { %v215_v12 = vpop.eup %214  ;;  %v175_v13 = vadd.f32 1.0, %v213_v11 }
 0x22f   :  { %v173_v14 = vadd.f32 1.0, %v215_v12 }
 0x230   :  { %v217_v15 = vpop.eup %216  ;;  %v178_v16 = vmul.f32 0.5, %v175_v13 }
 0x231   :  { %v176_v17 = vmul.f32 0.5, %v173_v14  ;;  %v174_v18 = vadd.f32 1.0, %v217_v15 }
 0x232   :  { %v181_v19 = vmul.f32 %v178_v16, %v150_v54 }
 0x233   :  { %v179_v20 = vmul.f32 %v176_v17, %v142_v56  ;;  %v177_v21 = vmul.f32 0.5, %v174_v18 }
 0x234   :  { %184 = vst [vmem:[%s300_s5 + $0x10] sm:$0x3f] %v181_v19 }
 0x235   :  { %182 = vst [vmem:[%s300_s5] sm:$0xff] %v179_v20  ;;  %v180_v22 = vmul.f32 %v177_v21, %v145_v61 }
 0x237   :  { %183 = vst [vmem:[%s300_s5 + $0x8] sm:$0xff] %v180_v22 }

// kernel: predictor_forward.25
= control target key start
LH: loop header
LB: loop body
LE: loop exit
PB: predicated region body
PF: predicated region fallthrough
CT: control target
= control target key end

     0   :  { %vm17_vm0 = vcmask 261120   ;;  %vm24_vm1 = vcmask 259072   ;;  %s147_s0 = inlined_call_operand.vmem [shape: f32[22,32], index: 0, kind: input, shape index: {}]   ;;  %s148_s1 = inlined_call_operand.vmem [shape: f32[1,32], index: 1, kind: input, shape index: {}]   ;;  %s149_s2 = inlined_call_operand.vmem [shape: f32[1,32], index: 2, kind: input, shape index: {}]   ;;  %s150_s3 = inlined_call_operand.vmem [shape: f32[22,32], index: 3, kind: output, shape index: {}]  }
   0x1   :  { %v14_v0 = vld [vmem:[%s147_s0] sm:$0xff]  ;;  %v16_v1 = vld [vmem:[%s147_s0 + $0x10] sm:$0x3f]  ;;  %v15_v2 = vld [vmem:[%s147_s0 + $0x8] sm:$0xff] }
   0x2   :  { %v18_v3 = vsel %vm17_vm0, %v14_v0, 0.0  ;;  %v25_v4 = vsel %vm24_vm1, %v16_v1, 0.0  ;;  %v21_v5 = vsel %vm17_vm0, %v15_v2, 0.0  ;;  %v86_v31 = vld [vmem:[%s148_s1] ss:$0 sm:$0xff] }
   0x3   :  { %19 = vadd.xlane.f32.xlu0 %v18_v3  ;;  %26 = vadd.xlane.f32.xlu1 %v25_v4  ;;  %v87_v33 = vld [vmem:[%s149_s2] ss:$0 sm:$0xff] }
   0x7   :  { %22 = vadd.xlane.f32.xlu0 %v21_v5 }
  0x90   :  { %v20_v6 = vpop.xlane.xlu0 %19  ;;  %v27_v7 = vpop.xlane.xlu1 %26 }
  0x91   :  { %v29_v8 = vmul.f32 0.03125, %v20_v6  ;;  %v31_v9 = vmul.f32 0.03125, %v27_v7 }
  0x93   :  { %v32_v10 = vsub.f32 %v14_v0, %v29_v8  ;;  %v34_v11 = vsub.f32 %v16_v1, %v31_v9 }
  0x94   :  { %v23_v12 = vpop.xlane.xlu0 %22 }
  0x95   :  { %v30_v13 = vmul.f32 0.03125, %v23_v12  ;;  %v35_v14 = vmul.f32 %v32_v10, %v32_v10  ;;  %v37_v15 = vmul.f32 %v34_v11, %v34_v11 }
  0x97   :  { %v33_v16 = vsub.f32 %v15_v2, %v30_v13  ;;  %v38_v17 = vsel %vm17_vm0, %v35_v14, 0.0  ;;  %v44_v18 = vsel %vm24_vm1, %v37_v15, 0.0 }
  0x98   :  { %39 = vadd.xlane.f32.xlu1 %v38_v17 }
  0x99   :  { %v36_v19 = vmul.f32 %v33_v16, %v33_v16 }
  0x9b   :  { %v41_v20 = vsel %vm17_vm0, %v36_v19, 0.0 }
  0x9c   :  { %45 = vadd.xlane.f32.xlu1 %v44_v18  ;;  %42 = vadd.xlane.f32.xlu0 %v41_v20 }
 0x125   :  { %v40_v21 = vpop.xlane.xlu1 %39 }
 0x126   :  { %v47_v22 = vmul.f32 0.03125, %v40_v21 }
 0x128   :  { %v50_v23 = vadd.f32 1e-05, %v47_v22 }
 0x129   :  { %v46_v24 = vpop.xlane.xlu1 %45  ;;  %v43_v25 = vpop.xlane.xlu0 %42 }
 0x12a   :  { %88 = vrsqrt.f32 %v50_v23  ;;  %v49_v26 = vmul.f32 0.03125, %v46_v24  ;;  %v48_v27 = vmul.f32 0.03125, %v43_v25 }
 0x12c   :  { %v52_v28 = vadd.f32 1e-05, %v49_v26  ;;  %v51_v29 = vadd.f32 1e-05, %v48_v27 }
 0x12e   :  { %90 = vrsqrt.f32 %v52_v28 }
 0x12f   :  { %92 = vrsqrt.f32 %v51_v29 }
 0x134   :  { %v89_v30 = vpop.eup %88 }
 0x135   :  { %v56_v32 = vmul.f32 %v89_v30, %v32_v10 }
 0x137   :  { %v66_v34 = vmul.f32 %v86_v31, %v56_v32 }
 0x138   :  { %v91_v35 = vpop.eup %90 }
 0x139   :  { %v93_v36 = vpop.eup %92  ;;  %v76_v37 = vadd.f32 %v87_v33, %v66_v34  ;;  %v58_v38 = vmul.f32 %v91_v35, %v34_v11 }
 0x13a   :  { %v57_v39 = vmul.f32 %v93_v36, %v33_v16 }
 0x13b   :  { %79 = vst.msk [vmem:[%s150_s3] sm:$0xff] %vm17_vm0, %v76_v37  ;;  %v68_v40 = vmul.f32 %v86_v31, %v58_v38 }
 0x13c   :  { %v67_v41 = vmul.f32 %v86_v31, %v57_v39 }
 0x13d   :  { %v78_v42 = vadd.f32 %v87_v33, %v68_v40 }
 0x13e   :  { %v77_v43 = vadd.f32 %v87_v33, %v67_v41 }
 0x13f   :  { %81 = vst.msk [vmem:[%s150_s3 + $0x10] sm:$0x3f] %vm24_vm1, %v78_v42 }
 0x140   :  { %80 = vst.msk [vmem:[%s150_s3 + $0x8] sm:$0xff] %vm17_vm0, %v77_v43 }

</bundles_post_ra>
